<compile_context>
chip_gen: v5e
topology: v5e:2x2
jax: 0.10.0
libtpu: 0.0.40
codegen_flags: <defaults>
</compile_context>

<pallas_src>
import numpy as np
import jax
import jax.numpy as jnp
from jax import lax
from jax.experimental import pallas as pl
from jax.experimental.pallas import tpu as pltpu

# ------------------------- small, deterministic config ----------------------
B = 2
H_RES, W_RES = 4, 4
N = H_RES * W_RES            # 16 tokens
BNTOK = B * N                # 32 flattened tokens
DIM = 32                     # channels
NUM_HEADS = 4
HEAD_DIM = DIM // NUM_HEADS  # 8
MLP_RATIO = 4
HIDDEN = DIM * MLP_RATIO     # 128
KTAPS = 9                    # 3x3 depthwise taps
LN_EPS = 1e-5
BN_EPS = 1e-5

assert BNTOK == DIM, "packing below assumes B*N == DIM (toy size)"

# ----- packed per-channel vectors: pvec has shape (NVEC_ROWS, DIM) ----------
(VROW_LN1W, VROW_LN1B, VROW_TEMP, VROW_PROJB, VROW_G1,
 VROW_LN3W, VROW_LN3B, VROW_C1B, VROW_BNW, VROW_BNB,
 VROW_C2B, VROW_G3, VROW_LN2W, VROW_LN2B, VROW_FC2B, VROW_G2) = range(16)
VROW_C1W = 16                       # 9 rows of conv1 depthwise taps
VROW_C2W = 16 + KTAPS               # 9 rows of conv2 depthwise taps
NVEC_ROWS = 16 + 2 * KTAPS          # 34

# ----- packed matrices: pmat has shape (DIM, PM_COLS) ------------------------
PM_QKV = 0                          # (DIM, 3*DIM)  qkv weight
PM_PROJ = PM_QKV + 3 * DIM          # (DIM, DIM)    attn output projection
PM_FC1 = PM_PROJ + DIM              # (DIM, HIDDEN) MLP fc1
PM_MASK = PM_FC1 + HIDDEN           # (DIM, DIM)    additive head-block mask
PM_SROW = PM_MASK + DIM             # (B*N, KTAPS*B*N) concatenated shift mats
PM_COLS = PM_SROW + KTAPS * BNTOK   # 576


# --------------------------------- kernel -----------------------------------
def xcablock_kernel(x_ref, pvec_ref, pmat_ref, pfc2_ref, o_ref):
    x = x_ref[...]                                        # (B*N, DIM) f32

    def row(i):                                           # (1, DIM) f32
        return pvec_ref[i:i + 1, :]

    def layer_norm(v, wi, bi):
        mu = jnp.mean(v, axis=-1, keepdims=True)
        var = jnp.mean((v - mu) ** 2, axis=-1, keepdims=True)
        return (v - mu) * lax.rsqrt(var + LN_EPS) * row(wi) + row(bi)

    def gelu(v):                                          # tanh GELU (EUP)
        c = np.float32(np.sqrt(2.0 / np.pi))
        return 0.5 * v * (1.0 + jnp.tanh(c * (v + 0.044715 * (v * v * v))))

    def mm(a, b):                                         # bf16 MXU, f32 acc
        return jnp.dot(a.astype(jnp.bfloat16), b.astype(jnp.bfloat16),
                       preferred_element_type=jnp.float32)

    # -------------------------------- XCA ------------------------------------
    xn = layer_norm(x, VROW_LN1W, VROW_LN1B)              # (B*N, DIM)
    qkv = mm(xn, pmat_ref[:, PM_QKV:PM_QKV + 3 * DIM])    # one (32,32)x(32,96)
    qkv = qkv.reshape(B, N, 3 * DIM)
    q = qkv[:, :, 0:DIM]
    k = qkv[:, :, DIM:2 * DIM]
    v = qkv[:, :, 2 * DIM:3 * DIM]
    # F.normalize along the token axis (dim=-1 of the 'B H C N' layout)
    q = q * lax.rsqrt(jnp.maximum(jnp.sum(q * q, axis=1, keepdims=True), 1e-24))
    k = k * lax.rsqrt(jnp.maximum(jnp.sum(k * k, axis=1, keepdims=True), 1e-24))
    # fold per-head temperature into the q rows of the cross-covariance
    q = q * row(VROW_TEMP)
    # all-head cross-covariance in one batched matmul; mask off-head blocks
    g = jnp.einsum('bnc,bnd->bcd', q.astype(jnp.bfloat16), k.astype(jnp.bfloat16),
                   preferred_element_type=jnp.float32)    # (B, DIM, DIM)
    g = g + pmat_ref[:, PM_MASK:PM_MASK + DIM]            # -1e30 off diagonal blocks
    g = g - jnp.max(g, axis=-1, keepdims=True)
    e = jnp.exp(g)
    a = e * pl.reciprocal(jnp.sum(e, axis=-1, keepdims=True), approx=True)
    att = jnp.einsum('bnd,bcd->bnc', v.astype(jnp.bfloat16), a.astype(jnp.bfloat16),
                     preferred_element_type=jnp.float32).reshape(BNTOK, DIM)
    y = mm(att, pmat_ref[:, PM_PROJ:PM_PROJ + DIM]) + row(VROW_PROJB)
    x = x + row(VROW_G1) * y

    # -------- LPI: depthwise 3x3 conv -> GELU -> BatchNorm -> depthwise 3x3 --
    # TODO(synk): BatchNorm uses training-mode batch statistics; SyncBatchNorm
    # running-stat tracking / cross-replica sync omitted.
    srow = pmat_ref[:, PM_SROW:PM_SROW + KTAPS * BNTOK]   # (B*N, 9*B*N)
    h2 = layer_norm(x, VROW_LN3W, VROW_LN3B)              # (B*N, DIM)
    c1w = pvec_ref[VROW_C1W:VROW_C1W + KTAPS, :]          # (9, DIM)
    xs1 = (h2[None, :, :] * c1w[:, None, :]).reshape(KTAPS * BNTOK, DIM)
    acc = gelu(mm(srow, xs1) + row(VROW_C1B))             # single K=288 matmul
    mu = jnp.mean(acc, axis=0, keepdims=True)
    var = jnp.mean((acc - mu) ** 2, axis=0, keepdims=True)
    acc = (acc - mu) * lax.rsqrt(var + BN_EPS) * row(VROW_BNW) + row(VROW_BNB)
    c2w = pvec_ref[VROW_C2W:VROW_C2W + KTAPS, :]          # (9, DIM)
    xs2 = (acc[None, :, :] * c2w[:, None, :]).reshape(KTAPS * BNTOK, DIM)
    acc2 = mm(srow, xs2) + row(VROW_C2B)                  # single K=288 matmul
    x = x + row(VROW_G3) * acc2

    # -------------------------------- MLP ------------------------------------
    xm = layer_norm(x, VROW_LN2W, VROW_LN2B)
    hdn = gelu(mm(xm, pmat_ref[:, PM_FC1:PM_FC1 + HIDDEN]) + pfc2_ref[0:1, :])
    m2 = jnp.einsum('nh,ch->nc', hdn.astype(jnp.bfloat16),
                    pfc2_ref[1:1 + DIM, :].astype(jnp.bfloat16),
                    preferred_element_type=jnp.float32) + row(VROW_FC2B)
    x = x + row(VROW_G2) * m2

    o_ref[...] = x


# ------------------------------ host-side glue -------------------------------
def build_srow(H, W, batch):
    """[S_0 | ... | S_8] : 9 zero-padded spatial shifts, block-diag over batch."""
    n = H * W
    taps = np.zeros((KTAPS, n, n), np.float32)
    for t in range(KTAPS):
        di, dj = t // 3 - 1, t % 3 - 1
        for i in range(H):
            for j in range(W):
                ii, jj = i + di, j + dj
                if 0 <= ii < H and 0 <= jj < W:
                    taps[t, i * W + j, ii * W + jj] = 1.0
    eye = np.eye(batch, dtype=np.float32)
    return np.concatenate([np.kron(eye, taps[t]) for t in range(KTAPS)], axis=1)


def build_head_mask():
    m = np.full((DIM, DIM), -1e30, np.float32)
    for h in range(NUM_HEADS):
        lo, hi = h * HEAD_DIM, (h + 1) * HEAD_DIM
        m[lo:hi, lo:hi] = 0.0
    return m


def pack_params(p):
    np32 = lambda a: np.asarray(a, np.float32)
    temp_vec = np.repeat(np32(p['temperature']), HEAD_DIM)[None, :]   # (1, DIM)
    pvec = np.concatenate([
        np32(p['ln1_w']), np32(p['ln1_b']), temp_vec, np32(p['proj_b']),
        np32(p['gamma1']), np32(p['ln3_w']), np32(p['ln3_b']),
        np32(p['conv1_b']), np32(p['bn_w']), np32(p['bn_b']),
        np32(p['conv2_b']), np32(p['gamma3']), np32(p['ln2_w']),
        np32(p['ln2_b']), np32(p['fc2_b']), np32(p['gamma2']),
        np32(p['conv1_w']), np32(p['conv2_w'])], axis=0)               # (34, DIM)
    pmat = np.concatenate([
        np32(p['qkv_w']), np32(p['proj_w']), np32(p['fc1_w']),
        build_head_mask(), build_srow(H_RES, W_RES, B)], axis=1)       # (32, 576)
    pfc2 = np.concatenate([np32(p['fc1_b']), np32(p['fc2_w']).T], axis=0)  # (33,128)
    assert pvec.shape == (NVEC_ROWS, DIM)
    assert pmat.shape == (DIM, PM_COLS)
    assert pfc2.shape == (1 + DIM, HIDDEN)
    return jnp.asarray(pvec), jnp.asarray(pmat), jnp.asarray(pfc2)


def xcablock_forward(x, packed):
    pvec, pmat, pfc2 = packed
    vmem = pl.BlockSpec(memory_space=pltpu.MemorySpace.VMEM)
    out = pl.pallas_call(
        xcablock_kernel,
        out_shape=jax.ShapeDtypeStruct((BNTOK, DIM), jnp.float32),
        in_specs=[vmem, vmem, vmem, vmem],
        out_specs=vmem,
    )(x.reshape(BNTOK, DIM), pvec, pmat, pfc2)
    return out.reshape(B, N, DIM)


def reference_forward(x, p):
    """Plain-JAX reference mirroring the PyTorch forward (for validation)."""
    def layer_norm(v, w, b):
        mu = jnp.mean(v, axis=-1, keepdims=True)
        var = jnp.mean((v - mu) ** 2, axis=-1, keepdims=True)
        return (v - mu) / jnp.sqrt(var + LN_EPS) * w[0] + b[0]

    def gelu(v):
        return 0.5 * v * (1.0 + jax.scipy.special.erf(v / np.sqrt(2.0)))

    # XCA
    xn = layer_norm(x, p['ln1_w'], p['ln1_b'])
    qkv = (xn @ p['qkv_w']).reshape(B, N, 3, NUM_HEADS, HEAD_DIM)
    qkv = jnp.transpose(qkv, (2, 0, 3, 4, 1))        # (3, B, H, hd, N)
    q, k, v = qkv[0], qkv[1], qkv[2]
    q = q / jnp.maximum(jnp.linalg.norm(q, axis=-1, keepdims=True), 1e-12)
    k = k / jnp.maximum(jnp.linalg.norm(k, axis=-1, keepdims=True), 1e-12)
    attn = jnp.einsum('bhcn,bhdn->bhcd', q, k) * p['temperature'][None, :, None, None]
    attn = jax.nn.softmax(attn, axis=-1)
    out = jnp.einsum('bhcd,bhdn->bhcn', attn, v)
    out = jnp.transpose(out, (0, 3, 1, 2)).reshape(B, N, DIM)
    x = x + p['gamma1'][0] * (out @ p['proj_w'] + p['proj_b'][0])

    # LPI (depthwise convs in NHWC)
    h3 = layer_norm(x, p['ln3_w'], p['ln3_b']).reshape(B, H_RES, W_RES, DIM)
    w1 = p['conv1_w'].reshape(3, 3, 1, DIM)
    w2 = p['conv2_w'].reshape(3, 3, 1, DIM)
    dn = lax.conv_dimension_numbers(h3.shape, w1.shape, ('NHWC', 'HWIO', 'NHWC'))
    c = lax.conv_general_dilated(h3, w1, (1, 1), 'SAME', dimension_numbers=dn,
                                 feature_group_count=DIM) + p['conv1_b'][0]
    c = gelu(c)
    mu = jnp.mean(c, axis=(0, 1, 2), keepdims=True)
    var = jnp.mean((c - mu) ** 2, axis=(0, 1, 2), keepdims=True)
    c = (c - mu) / jnp.sqrt(var + BN_EPS) * p['bn_w'][0] + p['bn_b'][0]
    c = lax.conv_general_dilated(c, w2, (1, 1), 'SAME', dimension_numbers=dn,
                                 feature_group_count=DIM) + p['conv2_b'][0]
    x = x + p['gamma3'][0] * c.reshape(B, N, DIM)

    # MLP
    xm = layer_norm(x, p['ln2_w'], p['ln2_b'])
    hdn = gelu(xm @ p['fc1_w'] + p['fc1_b'][0])
    x = x + p['gamma2'][0] * (hdn @ p['fc2_w'] + p['fc2_b'][0])
    return x


if __name__ == "__main__":
    key = jax.random.PRNGKey(0)
    ks = iter(jax.random.split(key, 32))

    def rnd(shape, scale):
        return scale * jax.random.normal(next(ks), shape, jnp.float32)

    params = dict(
        ln1_w=1.0 + rnd((1, DIM), 0.1), ln1_b=rnd((1, DIM), 0.05),
        qkv_w=rnd((DIM, 3 * DIM), 0.08),                      # qkv_bias=False
        temperature=1.0 + 0.1 * jnp.arange(NUM_HEADS, dtype=jnp.float32),
        proj_w=rnd((DIM, DIM), 0.08), proj_b=rnd((1, DIM), 0.02),
        gamma1=jnp.ones((1, DIM), jnp.float32),               # eta = 1.0
        ln3_w=1.0 + rnd((1, DIM), 0.1), ln3_b=rnd((1, DIM), 0.05),
        conv1_w=rnd((KTAPS, DIM), 0.15), conv1_b=rnd((1, DIM), 0.02),
        bn_w=1.0 + rnd((1, DIM), 0.1), bn_b=rnd((1, DIM), 0.02),
        conv2_w=rnd((KTAPS, DIM), 0.15), conv2_b=rnd((1, DIM), 0.02),
        gamma3=jnp.ones((1, DIM), jnp.float32),
        ln2_w=1.0 + rnd((1, DIM), 0.1), ln2_b=rnd((1, DIM), 0.05),
        fc1_w=rnd((DIM, HIDDEN), 0.08), fc1_b=rnd((1, HIDDEN), 0.02),
        fc2_w=rnd((HIDDEN, DIM), 0.08), fc2_b=rnd((1, DIM), 0.02),
        gamma2=jnp.ones((1, DIM), jnp.float32),
    )
    x = jax.random.normal(next(ks), (B, N, DIM), jnp.float32)

    packed = pack_params(params)
    out = jax.block_until_ready(xcablock_forward(x, packed))
    ref = jax.block_until_ready(reference_forward(x, params))
    assert out.shape == (B, N, DIM)
    err = float(jnp.max(jnp.abs(out - ref)))
    assert err < 3e-2, f"max abs diff too large: {err}"
    print("KERNEL_OK")
</pallas_src>

<mosaic_0001>
module attributes {stable_mosaic.version = 11 : i64} {
  func.func @xcablock_kernel(%arg0: memref<32x32xf32, #tpu.memory_space<vmem>>, %arg1: memref<34x32xf32, #tpu.memory_space<vmem>>, %arg2: memref<32x576xf32, #tpu.memory_space<vmem>>, %arg3: memref<33x128xf32, #tpu.memory_space<vmem>>, %arg4: memref<32x32xf32, #tpu.memory_space<vmem>>) attributes {dimension_semantics = [], scalar_prefetch = 0 : i64, scratch_operands = 0 : i64, tpu.core_type = #tpu.core_type<tc>} {
    %c0 = arith.constant 0 : index
    %c0_0 = arith.constant 0 : index
    %0 = vector.load %arg0[%c0, %c0_0] : memref<32x32xf32, #tpu.memory_space<vmem>>, vector<32x32xf32>
    %cst = arith.constant dense<0.000000e+00> : vector<32xf32>
    %1 = vector.multi_reduction <add>, %0, %cst [1] : vector<32x32xf32> to vector<32xf32>
    %2 = vector.shape_cast %1 : vector<32xf32> to vector<32x1xf32>
    %cst_1 = arith.constant 3.200000e+01 : f32
    %3 = vector.broadcast %cst_1 : f32 to vector<32x1xf32>
    %4 = arith.divf %2, %3 : vector<32x1xf32>
    %5 = vector.broadcast %4 : vector<32x1xf32> to vector<32x32xf32>
    %6 = arith.subf %0, %5 : vector<32x32xf32>
    %7 = arith.mulf %6, %6 : vector<32x32xf32>
    %cst_2 = arith.constant dense<0.000000e+00> : vector<32xf32>
    %8 = vector.multi_reduction <add>, %7, %cst_2 [1] : vector<32x32xf32> to vector<32xf32>
    %9 = vector.shape_cast %8 : vector<32xf32> to vector<32x1xf32>
    %cst_3 = arith.constant 3.200000e+01 : f32
    %10 = vector.broadcast %cst_3 : f32 to vector<32x1xf32>
    %11 = arith.divf %9, %10 : vector<32x1xf32>
    %12 = vector.broadcast %4 : vector<32x1xf32> to vector<32x32xf32>
    %13 = arith.subf %0, %12 : vector<32x32xf32>
    %cst_4 = arith.constant 9.99999974E-6 : f32
    %14 = vector.broadcast %cst_4 : f32 to vector<32x1xf32>
    %15 = arith.addf %11, %14 : vector<32x1xf32>
    %16 = math.rsqrt %15 : vector<32x1xf32>
    %17 = vector.broadcast %16 : vector<32x1xf32> to vector<32x32xf32>
    %18 = arith.mulf %13, %17 : vector<32x32xf32>
    %c0_5 = arith.constant 0 : index
    %c0_6 = arith.constant 0 : index
    %19 = vector.load %arg1[%c0_5, %c0_6] : memref<34x32xf32, #tpu.memory_space<vmem>>, vector<1x32xf32>
    %20 = vector.broadcast %19 : vector<1x32xf32> to vector<32x32xf32>
    %21 = arith.mulf %18, %20 : vector<32x32xf32>
    %c1 = arith.constant 1 : index
    %c0_7 = arith.constant 0 : index
    %22 = vector.load %arg1[%c1, %c0_7] : memref<34x32xf32, #tpu.memory_space<vmem>>, vector<1x32xf32>
    %23 = vector.broadcast %22 : vector<1x32xf32> to vector<32x32xf32>
    %24 = arith.addf %21, %23 : vector<32x32xf32>
    %c0_8 = arith.constant 0 : index
    %c0_9 = arith.constant 0 : index
    %25 = vector.load %arg2[%c0_8, %c0_9] : memref<32x576xf32, #tpu.memory_space<vmem>>, vector<32x96xf32>
    %26 = arith.truncf %24 : vector<32x32xf32> to vector<32x32xbf16>
    %27 = arith.truncf %25 : vector<32x96xf32> to vector<32x96xbf16>
    %cst_10 = arith.constant dense<0.000000e+00> : vector<32x96xf32>
    %28 = tpu.matmul %26, %27, %cst_10 {dimension_numbers = #tpu.dot_dimension_numbers<[1], [0], [0], [1], [0, 0, 1, 1], [], []>} : vector<32x32xbf16>, vector<32x96xbf16>, vector<32x96xf32> -> vector<32x96xf32>
    %29 = vector.shape_cast %28 : vector<32x96xf32> to vector<2x16x96xf32>
    %30 = vector.extract_strided_slice %29 {offsets = [0, 0, 0], sizes = [2, 16, 32], strides = [1, 1, 1]} : vector<2x16x96xf32> to vector<2x16x32xf32>
    %31 = vector.extract_strided_slice %29 {offsets = [0, 0, 32], sizes = [2, 16, 32], strides = [1, 1, 1]} : vector<2x16x96xf32> to vector<2x16x32xf32>
    %32 = vector.extract_strided_slice %29 {offsets = [0, 0, 64], sizes = [2, 16, 32], strides = [1, 1, 1]} : vector<2x16x96xf32> to vector<2x16x32xf32>
    %33 = arith.mulf %30, %30 : vector<2x16x32xf32>
    %cst_11 = arith.constant dense<0.000000e+00> : vector<2x32xf32>
    %34 = vector.multi_reduction <add>, %33, %cst_11 [1] : vector<2x16x32xf32> to vector<2x32xf32>
    %35 = vector.shape_cast %34 : vector<2x32xf32> to vector<2x1x32xf32>
    %cst_12 = arith.constant 1.000000e-24 : f32
    %36 = vector.broadcast %cst_12 : f32 to vector<2x1x32xf32>
    %37 = arith.maximumf %35, %36 : vector<2x1x32xf32>
    %38 = math.rsqrt %37 : vector<2x1x32xf32>
    %39 = vector.broadcast %38 : vector<2x1x32xf32> to vector<2x16x32xf32>
    %40 = arith.mulf %30, %39 : vector<2x16x32xf32>
    %41 = arith.mulf %31, %31 : vector<2x16x32xf32>
    %cst_13 = arith.constant dense<0.000000e+00> : vector<2x32xf32>
    %42 = vector.multi_reduction <add>, %41, %cst_13 [1] : vector<2x16x32xf32> to vector<2x32xf32>
    %43 = vector.shape_cast %42 : vector<2x32xf32> to vector<2x1x32xf32>
    %cst_14 = arith.constant 1.000000e-24 : f32
    %44 = vector.broadcast %cst_14 : f32 to vector<2x1x32xf32>
    %45 = arith.maximumf %43, %44 : vector<2x1x32xf32>
    %46 = math.rsqrt %45 : vector<2x1x32xf32>
    %47 = vector.broadcast %46 : vector<2x1x32xf32> to vector<2x16x32xf32>
    %48 = arith.mulf %31, %47 : vector<2x16x32xf32>
    %c2 = arith.constant 2 : index
    %c0_15 = arith.constant 0 : index
    %49 = vector.load %arg1[%c2, %c0_15] : memref<34x32xf32, #tpu.memory_space<vmem>>, vector<1x32xf32>
    %50 = vector.shape_cast %49 : vector<1x32xf32> to vector<1x1x32xf32>
    %51 = vector.broadcast %50 : vector<1x1x32xf32> to vector<2x16x32xf32>
    %52 = arith.mulf %40, %51 : vector<2x16x32xf32>
    %53 = arith.truncf %52 : vector<2x16x32xf32> to vector<2x16x32xbf16>
    %54 = arith.truncf %48 : vector<2x16x32xf32> to vector<2x16x32xbf16>
    "tpu.trace_start"() <{level = 10 : i32, message = "bnc,bnd->bcd"}> : () -> ()
    %cst_16 = arith.constant dense<0.000000e+00> : vector<2x32x32xf32>
    %55 = tpu.matmul %53, %54, %cst_16 {dimension_numbers = #tpu.dot_dimension_numbers<[1], [1], [2], [2], [0, 0, 0, 2, 1, 2], [0], [0]>} : vector<2x16x32xbf16>, vector<2x16x32xbf16>, vector<2x32x32xf32> -> vector<2x32x32xf32>
    "tpu.trace_stop"() : () -> ()
    %c0_17 = arith.constant 0 : index
    %c256 = arith.constant 256 : index
    %56 = vector.load %arg2[%c0_17, %c256] : memref<32x576xf32, #tpu.memory_space<vmem>>, vector<32x32xf32>
    %57 = vector.shape_cast %56 : vector<32x32xf32> to vector<1x32x32xf32>
    %58 = vector.broadcast %57 : vector<1x32x32xf32> to vector<2x32x32xf32>
    %59 = arith.addf %55, %58 : vector<2x32x32xf32>
    %cst_18 = arith.constant dense<0xFF800000> : vector<2x32xf32>
    %60 = vector.multi_reduction <maximumf>, %59, %cst_18 [2] : vector<2x32x32xf32> to vector<2x32xf32>
    %61 = vector.shape_cast %60 : vector<2x32xf32> to vector<2x32x1xf32>
    %62 = vector.broadcast %61 : vector<2x32x1xf32> to vector<2x32x32xf32>
    %63 = arith.subf %59, %62 : vector<2x32x32xf32>
    %64 = math.exp %63 : vector<2x32x32xf32>
    %cst_19 = arith.constant dense<0.000000e+00> : vector<2x32xf32>
    %65 = vector.multi_reduction <add>, %64, %cst_19 [2] : vector<2x32x32xf32> to vector<2x32xf32>
    %66 = vector.shape_cast %65 : vector<2x32xf32> to vector<2x32x1xf32>
    %67 = tpu.reciprocal %66 {approx = true} : vector<2x32x1xf32> -> vector<2x32x1xf32>
    %68 = vector.broadcast %67 : vector<2x32x1xf32> to vector<2x32x32xf32>
    %69 = arith.mulf %64, %68 : vector<2x32x32xf32>
    %70 = arith.truncf %32 : vector<2x16x32xf32> to vector<2x16x32xbf16>
    %71 = arith.truncf %69 : vector<2x32x32xf32> to vector<2x32x32xbf16>
    "tpu.trace_start"() <{level = 10 : i32, message = "bnd,bcd->bnc"}> : () -> ()
    %cst_20 = arith.constant dense<0.000000e+00> : vector<2x16x32xf32>
    %72 = tpu.matmul %70, %71, %cst_20 {dimension_numbers = #tpu.dot_dimension_numbers<[2], [2], [1], [1], [0, 0, 0, 1, 1, 1], [0], [0]>} : vector<2x16x32xbf16>, vector<2x32x32xbf16>, vector<2x16x32xf32> -> vector<2x16x32xf32>
    "tpu.trace_stop"() : () -> ()
    %73 = vector.shape_cast %72 : vector<2x16x32xf32> to vector<32x32xf32>
    %c0_21 = arith.constant 0 : index
    %c96 = arith.constant 96 : index
    %74 = vector.load %arg2[%c0_21, %c96] : memref<32x576xf32, #tpu.memory_space<vmem>>, vector<32x32xf32>
    %75 = arith.truncf %73 : vector<32x32xf32> to vector<32x32xbf16>
    %76 = arith.truncf %74 : vector<32x32xf32> to vector<32x32xbf16>
    %cst_22 = arith.constant dense<0.000000e+00> : vector<32x32xf32>
    %77 = tpu.matmul %75, %76, %cst_22 {dimension_numbers = #tpu.dot_dimension_numbers<[1], [0], [0], [1], [0, 0, 1, 1], [], []>} : vector<32x32xbf16>, vector<32x32xbf16>, vector<32x32xf32> -> vector<32x32xf32>
    %c3 = arith.constant 3 : index
    %c0_23 = arith.constant 0 : index
    %78 = vector.load %arg1[%c3, %c0_23] : memref<34x32xf32, #tpu.memory_space<vmem>>, vector<1x32xf32>
    %79 = vector.broadcast %78 : vector<1x32xf32> to vector<32x32xf32>
    %80 = arith.addf %77, %79 : vector<32x32xf32>
    %c4 = arith.constant 4 : index
    %c0_24 = arith.constant 0 : index
    %81 = vector.load %arg1[%c4, %c0_24] : memref<34x32xf32, #tpu.memory_space<vmem>>, vector<1x32xf32>
    %82 = vector.broadcast %81 : vector<1x32xf32> to vector<32x32xf32>
    %83 = arith.mulf %82, %80 : vector<32x32xf32>
    %84 = arith.addf %0, %83 : vector<32x32xf32>
    %c0_25 = arith.constant 0 : index
    %c288 = arith.constant 288 : index
    %85 = vector.load %arg2[%c0_25, %c288] : memref<32x576xf32, #tpu.memory_space<vmem>>, vector<32x288xf32>
    %cst_26 = arith.constant dense<0.000000e+00> : vector<32xf32>
    %86 = vector.multi_reduction <add>, %84, %cst_26 [1] : vector<32x32xf32> to vector<32xf32>
    %87 = vector.shape_cast %86 : vector<32xf32> to vector<32x1xf32>
    %cst_27 = arith.constant 3.200000e+01 : f32
    %88 = vector.broadcast %cst_27 : f32 to vector<32x1xf32>
    %89 = arith.divf %87, %88 : vector<32x1xf32>
    %90 = vector.broadcast %89 : vector<32x1xf32> to vector<32x32xf32>
    %91 = arith.subf %84, %90 : vector<32x32xf32>
    %92 = arith.mulf %91, %91 : vector<32x32xf32>
    %cst_28 = arith.constant dense<0.000000e+00> : vector<32xf32>
    %93 = vector.multi_reduction <add>, %92, %cst_28 [1] : vector<32x32xf32> to vector<32xf32>
    %94 = vector.shape_cast %93 : vector<32xf32> to vector<32x1xf32>
    %cst_29 = arith.constant 3.200000e+01 : f32
    %95 = vector.broadcast %cst_29 : f32 to vector<32x1xf32>
    %96 = arith.divf %94, %95 : vector<32x1xf32>
    %97 = vector.broadcast %89 : vector<32x1xf32> to vector<32x32xf32>
    %98 = arith.subf %84, %97 : vector<32x32xf32>
    %cst_30 = arith.constant 9.99999974E-6 : f32
    %99 = vector.broadcast %cst_30 : f32 to vector<32x1xf32>
    %100 = arith.addf %96, %99 : vector<32x1xf32>
    %101 = math.rsqrt %100 : vector<32x1xf32>
    %102 = vector.broadcast %101 : vector<32x1xf32> to vector<32x32xf32>
    %103 = arith.mulf %98, %102 : vector<32x32xf32>
    %c5 = arith.constant 5 : index
    %c0_31 = arith.constant 0 : index
    %104 = vector.load %arg1[%c5, %c0_31] : memref<34x32xf32, #tpu.memory_space<vmem>>, vector<1x32xf32>
    %105 = vector.broadcast %104 : vector<1x32xf32> to vector<32x32xf32>
    %106 = arith.mulf %103, %105 : vector<32x32xf32>
    %c6 = arith.constant 6 : index
    %c0_32 = arith.constant 0 : index
    %107 = vector.load %arg1[%c6, %c0_32] : memref<34x32xf32, #tpu.memory_space<vmem>>, vector<1x32xf32>
    %108 = vector.broadcast %107 : vector<1x32xf32> to vector<32x32xf32>
    %109 = arith.addf %106, %108 : vector<32x32xf32>
    %c16 = arith.constant 16 : index
    %c0_33 = arith.constant 0 : index
    %110 = vector.load %arg1[%c16, %c0_33] : memref<34x32xf32, #tpu.memory_space<vmem>>, vector<9x32xf32>
    %111 = vector.shape_cast %109 : vector<32x32xf32> to vector<1x32x32xf32>
    %112 = vector.shape_cast %110 : vector<9x32xf32> to vector<9x1x32xf32>
    %113 = vector.broadcast %111 : vector<1x32x32xf32> to vector<9x32x32xf32>
    %114 = vector.broadcast %112 : vector<9x1x32xf32> to vector<9x32x32xf32>
    %115 = arith.mulf %113, %114 : vector<9x32x32xf32>
    %116 = vector.shape_cast %115 : vector<9x32x32xf32> to vector<288x32xf32>
    %117 = arith.truncf %85 : vector<32x288xf32> to vector<32x288xbf16>
    %118 = arith.truncf %116 : vector<288x32xf32> to vector<288x32xbf16>
    %cst_34 = arith.constant dense<0.000000e+00> : vector<32x32xf32>
    %119 = tpu.matmul %117, %118, %cst_34 {dimension_numbers = #tpu.dot_dimension_numbers<[1], [0], [0], [1], [0, 0, 1, 1], [], []>} : vector<32x288xbf16>, vector<288x32xbf16>, vector<32x32xf32> -> vector<32x32xf32>
    %c7 = arith.constant 7 : index
    %c0_35 = arith.constant 0 : index
    %120 = vector.load %arg1[%c7, %c0_35] : memref<34x32xf32, #tpu.memory_space<vmem>>, vector<1x32xf32>
    %121 = vector.broadcast %120 : vector<1x32xf32> to vector<32x32xf32>
    %122 = arith.addf %119, %121 : vector<32x32xf32>
    %cst_36 = arith.constant 5.000000e-01 : f32
    %123 = vector.broadcast %cst_36 : f32 to vector<32x32xf32>
    %124 = arith.mulf %123, %122 : vector<32x32xf32>
    %125 = arith.mulf %122, %122 : vector<32x32xf32>
    %126 = arith.mulf %125, %122 : vector<32x32xf32>
    %cst_37 = arith.constant 4.471500e-02 : f32
    %127 = vector.broadcast %cst_37 : f32 to vector<32x32xf32>
    %128 = arith.mulf %127, %126 : vector<32x32xf32>
    %129 = arith.addf %122, %128 : vector<32x32xf32>
    %cst_38 = arith.constant 0.797884583 : f32
    %130 = vector.broadcast %cst_38 : f32 to vector<32x32xf32>
    %131 = arith.mulf %130, %129 : vector<32x32xf32>
    %132 = math.tanh %131 : vector<32x32xf32>
    %cst_39 = arith.constant 1.000000e+00 : f32
    %133 = vector.broadcast %cst_39 : f32 to vector<32x32xf32>
    %134 = arith.addf %133, %132 : vector<32x32xf32>
    %135 = arith.mulf %124, %134 : vector<32x32xf32>
    %cst_40 = arith.constant dense<0.000000e+00> : vector<32xf32>
    %136 = vector.multi_reduction <add>, %135, %cst_40 [0] : vector<32x32xf32> to vector<32xf32>
    %137 = vector.shape_cast %136 : vector<32xf32> to vector<1x32xf32>
    %cst_41 = arith.constant 3.200000e+01 : f32
    %138 = vector.broadcast %cst_41 : f32 to vector<1x32xf32>
    %139 = arith.divf %137, %138 : vector<1x32xf32>
    %140 = vector.broadcast %139 : vector<1x32xf32> to vector<32x32xf32>
    %141 = arith.subf %135, %140 : vector<32x32xf32>
    %142 = arith.mulf %141, %141 : vector<32x32xf32>
    %cst_42 = arith.constant dense<0.000000e+00> : vector<32xf32>
    %143 = vector.multi_reduction <add>, %142, %cst_42 [0] : vector<32x32xf32> to vector<32xf32>
    %144 = vector.shape_cast %143 : vector<32xf32> to vector<1x32xf32>
    %cst_43 = arith.constant 3.200000e+01 : f32
    %145 = vector.broadcast %cst_43 : f32 to vector<1x32xf32>
    %146 = arith.divf %144, %145 : vector<1x32xf32>
    %147 = vector.broadcast %139 : vector<1x32xf32> to vector<32x32xf32>
    %148 = arith.subf %135, %147 : vector<32x32xf32>
    %cst_44 = arith.constant 9.99999974E-6 : f32
    %149 = vector.broadcast %cst_44 : f32 to vector<1x32xf32>
    %150 = arith.addf %146, %149 : vector<1x32xf32>
    %151 = math.rsqrt %150 : vector<1x32xf32>
    %152 = vector.broadcast %151 : vector<1x32xf32> to vector<32x32xf32>
    %153 = arith.mulf %148, %152 : vector<32x32xf32>
    %c8 = arith.constant 8 : index
    %c0_45 = arith.constant 0 : index
    %154 = vector.load %arg1[%c8, %c0_45] : memref<34x32xf32, #tpu.memory_space<vmem>>, vector<1x32xf32>
    %155 = vector.broadcast %154 : vector<1x32xf32> to vector<32x32xf32>
    %156 = arith.mulf %153, %155 : vector<32x32xf32>
    %c9 = arith.constant 9 : index
    %c0_46 = arith.constant 0 : index
    %157 = vector.load %arg1[%c9, %c0_46] : memref<34x32xf32, #tpu.memory_space<vmem>>, vector<1x32xf32>
    %158 = vector.broadcast %157 : vector<1x32xf32> to vector<32x32xf32>
    %159 = arith.addf %156, %158 : vector<32x32xf32>
    %c25 = arith.constant 25 : index
    %c0_47 = arith.constant 0 : index
    %160 = vector.load %arg1[%c25, %c0_47] : memref<34x32xf32, #tpu.memory_space<vmem>>, vector<9x32xf32>
    %161 = vector.shape_cast %159 : vector<32x32xf32> to vector<1x32x32xf32>
    %162 = vector.shape_cast %160 : vector<9x32xf32> to vector<9x1x32xf32>
    %163 = vector.broadcast %161 : vector<1x32x32xf32> to vector<9x32x32xf32>
    %164 = vector.broadcast %162 : vector<9x1x32xf32> to vector<9x32x32xf32>
    %165 = arith.mulf %163, %164 : vector<9x32x32xf32>
    %166 = vector.shape_cast %165 : vector<9x32x32xf32> to vector<288x32xf32>
    %167 = arith.truncf %85 : vector<32x288xf32> to vector<32x288xbf16>
    %168 = arith.truncf %166 : vector<288x32xf32> to vector<288x32xbf16>
    %cst_48 = arith.constant dense<0.000000e+00> : vector<32x32xf32>
    %169 = tpu.matmul %167, %168, %cst_48 {dimension_numbers = #tpu.dot_dimension_numbers<[1], [0], [0], [1], [0, 0, 1, 1], [], []>} : vector<32x288xbf16>, vector<288x32xbf16>, vector<32x32xf32> -> vector<32x32xf32>
    %c10 = arith.constant 10 : index
    %c0_49 = arith.constant 0 : index
    %170 = vector.load %arg1[%c10, %c0_49] : memref<34x32xf32, #tpu.memory_space<vmem>>, vector<1x32xf32>
    %171 = vector.broadcast %170 : vector<1x32xf32> to vector<32x32xf32>
    %172 = arith.addf %169, %171 : vector<32x32xf32>
    %c11 = arith.constant 11 : index
    %c0_50 = arith.constant 0 : index
    %173 = vector.load %arg1[%c11, %c0_50] : memref<34x32xf32, #tpu.memory_space<vmem>>, vector<1x32xf32>
    %174 = vector.broadcast %173 : vector<1x32xf32> to vector<32x32xf32>
    %175 = arith.mulf %174, %172 : vector<32x32xf32>
    %176 = arith.addf %84, %175 : vector<32x32xf32>
    %cst_51 = arith.constant dense<0.000000e+00> : vector<32xf32>
    %177 = vector.multi_reduction <add>, %176, %cst_51 [1] : vector<32x32xf32> to vector<32xf32>
    %178 = vector.shape_cast %177 : vector<32xf32> to vector<32x1xf32>
    %cst_52 = arith.constant 3.200000e+01 : f32
    %179 = vector.broadcast %cst_52 : f32 to vector<32x1xf32>
    %180 = arith.divf %178, %179 : vector<32x1xf32>
    %181 = vector.broadcast %180 : vector<32x1xf32> to vector<32x32xf32>
    %182 = arith.subf %176, %181 : vector<32x32xf32>
    %183 = arith.mulf %182, %182 : vector<32x32xf32>
    %cst_53 = arith.constant dense<0.000000e+00> : vector<32xf32>
    %184 = vector.multi_reduction <add>, %183, %cst_53 [1] : vector<32x32xf32> to vector<32xf32>
    %185 = vector.shape_cast %184 : vector<32xf32> to vector<32x1xf32>
    %cst_54 = arith.constant 3.200000e+01 : f32
    %186 = vector.broadcast %cst_54 : f32 to vector<32x1xf32>
    %187 = arith.divf %185, %186 : vector<32x1xf32>
    %188 = vector.broadcast %180 : vector<32x1xf32> to vector<32x32xf32>
    %189 = arith.subf %176, %188 : vector<32x32xf32>
    %cst_55 = arith.constant 9.99999974E-6 : f32
    %190 = vector.broadcast %cst_55 : f32 to vector<32x1xf32>
    %191 = arith.addf %187, %190 : vector<32x1xf32>
    %192 = math.rsqrt %191 : vector<32x1xf32>
    %193 = vector.broadcast %192 : vector<32x1xf32> to vector<32x32xf32>
    %194 = arith.mulf %189, %193 : vector<32x32xf32>
    %c12 = arith.constant 12 : index
    %c0_56 = arith.constant 0 : index
    %195 = vector.load %arg1[%c12, %c0_56] : memref<34x32xf32, #tpu.memory_space<vmem>>, vector<1x32xf32>
    %196 = vector.broadcast %195 : vector<1x32xf32> to vector<32x32xf32>
    %197 = arith.mulf %194, %196 : vector<32x32xf32>
    %c13 = arith.constant 13 : index
    %c0_57 = arith.constant 0 : index
    %198 = vector.load %arg1[%c13, %c0_57] : memref<34x32xf32, #tpu.memory_space<vmem>>, vector<1x32xf32>
    %199 = vector.broadcast %198 : vector<1x32xf32> to vector<32x32xf32>
    %200 = arith.addf %197, %199 : vector<32x32xf32>
    %c0_58 = arith.constant 0 : index
    %c128 = arith.constant 128 : index
    %201 = vector.load %arg2[%c0_58, %c128] : memref<32x576xf32, #tpu.memory_space<vmem>>, vector<32x128xf32>
    %202 = arith.truncf %200 : vector<32x32xf32> to vector<32x32xbf16>
    %203 = arith.truncf %201 : vector<32x128xf32> to vector<32x128xbf16>
    %cst_59 = arith.constant dense<0.000000e+00> : vector<32x128xf32>
    %204 = tpu.matmul %202, %203, %cst_59 {dimension_numbers = #tpu.dot_dimension_numbers<[1], [0], [0], [1], [0, 0, 1, 1], [], []>} : vector<32x32xbf16>, vector<32x128xbf16>, vector<32x128xf32> -> vector<32x128xf32>
    %c0_60 = arith.constant 0 : index
    %c0_61 = arith.constant 0 : index
    %205 = vector.load %arg3[%c0_60, %c0_61] : memref<33x128xf32, #tpu.memory_space<vmem>>, vector<1x128xf32>
    %206 = vector.broadcast %205 : vector<1x128xf32> to vector<32x128xf32>
    %207 = arith.addf %204, %206 : vector<32x128xf32>
    %cst_62 = arith.constant 5.000000e-01 : f32
    %208 = vector.broadcast %cst_62 : f32 to vector<32x128xf32>
    %209 = arith.mulf %208, %207 : vector<32x128xf32>
    %210 = arith.mulf %207, %207 : vector<32x128xf32>
    %211 = arith.mulf %210, %207 : vector<32x128xf32>
    %cst_63 = arith.constant 4.471500e-02 : f32
    %212 = vector.broadcast %cst_63 : f32 to vector<32x128xf32>
    %213 = arith.mulf %212, %211 : vector<32x128xf32>
    %214 = arith.addf %207, %213 : vector<32x128xf32>
    %cst_64 = arith.constant 0.797884583 : f32
    %215 = vector.broadcast %cst_64 : f32 to vector<32x128xf32>
    %216 = arith.mulf %215, %214 : vector<32x128xf32>
    %217 = math.tanh %216 : vector<32x128xf32>
    %cst_65 = arith.constant 1.000000e+00 : f32
    %218 = vector.broadcast %cst_65 : f32 to vector<32x128xf32>
    %219 = arith.addf %218, %217 : vector<32x128xf32>
    %220 = arith.mulf %209, %219 : vector<32x128xf32>
    %221 = arith.truncf %220 : vector<32x128xf32> to vector<32x128xbf16>
    %c1_66 = arith.constant 1 : index
    %c0_67 = arith.constant 0 : index
    %222 = vector.load %arg3[%c1_66, %c0_67] : memref<33x128xf32, #tpu.memory_space<vmem>>, vector<32x128xf32>
    %223 = arith.truncf %222 : vector<32x128xf32> to vector<32x128xbf16>
    "tpu.trace_start"() <{level = 10 : i32, message = "nh,ch->nc"}> : () -> ()
    %cst_68 = arith.constant dense<0.000000e+00> : vector<32x32xf32>
    %224 = tpu.matmul %221, %223, %cst_68 {dimension_numbers = #tpu.dot_dimension_numbers<[1], [1], [0], [0], [0, 0, 1, 0], [], []>} : vector<32x128xbf16>, vector<32x128xbf16>, vector<32x32xf32> -> vector<32x32xf32>
    "tpu.trace_stop"() : () -> ()
    %c14 = arith.constant 14 : index
    %c0_69 = arith.constant 0 : index
    %225 = vector.load %arg1[%c14, %c0_69] : memref<34x32xf32, #tpu.memory_space<vmem>>, vector<1x32xf32>
    %226 = vector.broadcast %225 : vector<1x32xf32> to vector<32x32xf32>
    %227 = arith.addf %224, %226 : vector<32x32xf32>
    %c15 = arith.constant 15 : index
    %c0_70 = arith.constant 0 : index
    %228 = vector.load %arg1[%c15, %c0_70] : memref<34x32xf32, #tpu.memory_space<vmem>>, vector<1x32xf32>
    %229 = vector.broadcast %228 : vector<1x32xf32> to vector<32x32xf32>
    %230 = arith.mulf %229, %227 : vector<32x32xf32>
    %231 = arith.addf %176, %230 : vector<32x32xf32>
    %c0_71 = arith.constant 0 : index
    %c0_72 = arith.constant 0 : index
    %232 = vector.load %arg4[%c0_71, %c0_72] : memref<32x32xf32, #tpu.memory_space<vmem>>, vector<32x32xf32>
    tpu.vector_store %arg4[%c0_71, %c0_72], %231 {strides = array<i32>} : memref<32x32xf32, #tpu.memory_space<vmem>>, vector<32x32xf32>,
    return
  }
}

</mosaic_0001>

<bundles_post_ra>
// kernel: tpu_custom_call.1
= control target key start
LH: loop header
LB: loop body
LE: loop exit
PB: predicated region body
PF: predicated region fallthrough
CT: control target
= control target key end

     0   :  { %9 = vsyncpa [#allocation3], 0  ;;  %s2167_s0 = inlined_call_operand.vmem [shape: f32[32,32], index: 0, kind: input, shape index: {}]   ;;  %s2168_s1 = inlined_call_operand.vmem [shape: f32[34,32], index: 1, kind: input, shape index: {}]   ;;  %s2169_s2 = inlined_call_operand.hbm [shape: f32[32,576], index: 2, kind: input, shape index: {}]   ;;  %s2170_s3 = inlined_call_operand.vmem [shape: f32[33,128], index: 3, kind: input, shape index: {}]   ;;  %s2171_s4 = inlined_call_operand.hbm [shape: f32[32,32], index: 4, kind: output, shape index: {}]  }
   0x1   :  { %10 = vsyncpa [#allocation4], 0  ;;  %s19_s17 = sshll.u32 %s2169_s2, 4  ;;  %s1595_s18 = smov [#allocation2]   ;;  %s20_s17 = int_to_ptr.hbm [resolvable:$true] %s19_s17 }
   0x2   :  { %s21_s19 = sshll.u32 %s1595_s18, 4  ;;  %s1596_s20 = smov 640   ;;  %s22_s19 = int_to_ptr.vmem [resolvable:$true] %s21_s19 }
   0x3   :  { %s1597_s21 = smov 40  }
   0x4   :  { %27 = dma.hbm_to_vmem [thread:$0]  %s20_s17, 2560, %s22_s19, [#allocation3], %s1596_s20, %s1596_s20, %s1597_s21  }
   0x5   :  { %1591 = dma.done.wait [#allocation3], 2560  }
   0x6   :  { %1592 = vsyncadd [#allocation3], 4294964736  ;;  %vm39_vm0 = vcmask 261120   ;;  %v1636_v0 = vld [vmem:[%s2167_s0 + $0x10] sm:$0xff]  ;;  %v1641_v1 = vld [vmem:[%s2167_s0] sm:$0xff]  ;;  %v1598_v8 = vmov 32.0  }
   0x7   :  { %v1646_v2 = vld [vmem:[%s2167_s0 + $0x18] sm:$0xff]  ;;  %v46_v3 = vsel %vm39_vm0, %v1636_v0, 0.0  ;;  %v40_v4 = vsel %vm39_vm0, %v1641_v1, 0.0  ;;  %v1655_v5 = vld [vmem:[%s2167_s0 + $0x8] sm:$0xff]  ;;  %1459 = vrcp.f32 %v1598_v8  ;;  %v149_v35 = vld [vmem:[#allocation2 + $0x50] sm:$0xff]  ;;  %vm228_vm14 = vcmask 523520  }
   0x8   :  { %47 = vadd.xlane.f32.xlu1 %v46_v3  ;;  %41 = vadd.xlane.f32.xlu0 %v40_v4  ;;  %v49_v6 = vsel %vm39_vm0, %v1646_v2, 0.0  ;;  %v43_v7 = vsel %vm39_vm0, %v1655_v5, 0.0  ;;  %v150_v36 = vld [vmem:[#allocation2 + $0x78] sm:$0xff]  ;;  %v147_v39 = vld [vmem:[#allocation2] sm:$0xff]  ;;  %v148_v40 = vld [vmem:[#allocation2 + $0x28] sm:$0xff]  ;;  %s1599_s8 = smov 96  }
   0x9   :  { %v1691_v37 = vpack.c.bf16 %v150_v36, %v149_v35  ;;  %v1695_v43 = vpack.c.bf16 %v148_v40, %v147_v39  ;;  %s1600_s9 = smov 64   ;;  %s1601_s10 = smov 32  }
   0xa   :  { %s1399_s28 = sshll.u32 %s2171_s4, 4  ;;  %s1603_s0 = smov 128   ;;  %s1400_s28 = int_to_ptr.hbm [resolvable:$true] %s1399_s28 }
   0xb   :  { %167 = vmatpush.bf16.msra.mxu0 %v1691_v37  ;;  %s1604_s29 = smov 8  }
   0xd   :  { %v1460_v9 = vpop.eup %1459 }
   0xe   :  { %v53_v10 = vmul.f32 32.0, %v1460_v9  ;;  %vm57_vm1 = vweird.f32 %v1460_v9 }
   0xf   :  { %168 = vmatpush.bf16.msra.mxu0 %v1695_v43 }
  0x10   :  { %50 = vadd.xlane.f32.xlu1 %v49_v6  ;;  %44 = vadd.xlane.f32.xlu0 %v43_v7  ;;  %v54_v11 = vsub.f32 1.0, %v53_v10 }
  0x12   :  { %v55_v12 = vmul.f32 %v1460_v9, %v54_v11 }
  0x14   :  { %v56_v13 = vadd.f32 %v1460_v9, %v55_v12 }
  0x16   :  { %v1661_v14 = vsel %vm57_vm1, %v1460_v9, %v56_v13  ;;  %v1440_v13 = vld [vmem:[%s2168_s1] ss:$0 sm:$0xff] }
  0x7b   :  { %v48_v15 = vpop.xlane.xlu1 %47  ;;  %v42_v16 = vpop.xlane.xlu0 %41 }
  0x7c   :  { %v61_v17 = vmul.f32 %v1661_v14, %v48_v15  ;;  %v59_v18 = vmul.f32 %v1661_v14, %v42_v16 }
  0x7e   :  { %v1666_v19 = vsub.f32 %v1636_v0, %v61_v17  ;;  %v1669_v20 = vsub.f32 %v1641_v1, %v59_v18 }
  0x80   :  { %v69_v21 = vmul.f32 %v1666_v19, %v1666_v19  ;;  %v67_v22 = vmul.f32 %v1669_v20, %v1669_v20 }
  0x82   :  { %v77_v23 = vsel %vm39_vm0, %v69_v21, 0.0  ;;  %v71_v24 = vsel %vm39_vm0, %v67_v22, 0.0 }
  0x83   :  { %v51_v25 = vpop.xlane.xlu1 %50  ;;  %78 = vadd.xlane.f32.xlu0 %v77_v23  ;;  %72 = vadd.xlane.f32.xlu2 %v71_v24  ;;  %v45_v26 = vpop.xlane.xlu0 %44  ;;  %v1441_v23 = vld [vmem:[%s2168_s1 + $0x1] ss:$0 sm:$0xff] }
  0x84   :  { %v62_v27 = vmul.f32 %v1661_v14, %v51_v25  ;;  %v60_v28 = vmul.f32 %v1661_v14, %v45_v26 }
  0x86   :  { %v1680_v29 = vsub.f32 %v1646_v2, %v62_v27  ;;  %v1683_v30 = vsub.f32 %v1655_v5, %v60_v28 }
  0x88   :  { %v70_v31 = vmul.f32 %v1680_v29, %v1680_v29  ;;  %v68_v32 = vmul.f32 %v1683_v30, %v1683_v30 }
  0x8a   :  { %v80_v33 = vsel %vm39_vm0, %v70_v31, 0.0  ;;  %v74_v34 = vsel %vm39_vm0, %v68_v32, 0.0 }
  0x8b   :  { %81 = vadd.xlane.f32.xlu1 %v80_v33  ;;  %75 = vadd.xlane.f32.xlu2 %v74_v34 }
  0xf6   :  { %v73_v38 = vpop.xlane.xlu2 %72  ;;  %v79_v42 = vpop.xlane.xlu0 %78 }
  0xf7   :  { %v83_v41 = vmul.f32 %v73_v38, %v1661_v14  ;;  %v85_v45 = vmul.f32 %v79_v42, %v1661_v14 }
  0xf9   :  { %v87_v44 = vadd.f32 1e-05, %v83_v41  ;;  %v89_v46 = vadd.f32 1e-05, %v85_v45 }
  0xfb   :  { %1461 = vrsqrt.f32 %v87_v44  ;;  %vm97_vm3 = vweird.f32 %v87_v44  ;;  %vm117_vm10 = vweird.f32 %v89_v46 }
  0xfc   :  { %1463 = vrsqrt.f32 %v89_v46 }
  0xfe   :  { %v82_v47 = vpop.xlane.xlu1 %81  ;;  %v76_v48 = vpop.xlane.xlu2 %75 }
  0xff   :  { %v86_v49 = vmul.f32 %v82_v47, %v1661_v14  ;;  %v84_v50 = vmul.f32 %v76_v48, %v1661_v14 }
 0x101   :  { %v1462_v51 = vpop.eup %1461  ;;  %v90_v52 = vadd.f32 1e-05, %v86_v49  ;;  %v88_v53 = vadd.f32 1e-05, %v84_v50 }
 0x102   :  { %v92_v54 = vmul.f32 %v1462_v51, %v87_v44  ;;  %v1464_v57 = vpop.eup %1463  ;;  %vm98_vm2 = vweird.f32 %v1462_v51 }
 0x103   :  { %1465 = vrsqrt.f32 %v90_v52  ;;  %v112_v63 = vmul.f32 %v1464_v57, %v89_v46  ;;  %vm99_vm4 = vmor %vm97_vm3, %vm98_vm2  ;;  %vm107_vm6 = vweird.f32 %v88_v53  ;;  %vm127_vm8 = vweird.f32 %v90_v52 }
 0x104   :  { %v93_v55 = vmul.f32 %v1462_v51, %v92_v54  ;;  %1467 = vrsqrt.f32 %v88_v53  ;;  %vm118_vm11 = vweird.f32 %v1464_v57 }
 0x105   :  { %v113_v8 = vmul.f32 %v1464_v57, %v112_v63  ;;  %vm119_vm13 = vmor %vm117_vm10, %vm118_vm11 }
 0x106   :  { %v94_v56 = vmul.f32 0.5, %v93_v55 }
 0x107   :  { %v114_v15 = vmul.f32 0.5, %v113_v8 }
 0x108   :  { %v95_v58 = vsub.f32 1.5, %v94_v56 }
 0x109   :  { %v1466_v59 = vpop.eup %1465  ;;  %v115_v24 = vsub.f32 1.5, %v114_v15 }
 0x10a   :  { %v1468_v60 = vpop.eup %1467  ;;  %v122_v61 = vmul.f32 %v1466_v59, %v90_v52  ;;  %v96_v62 = vmul.f32 %v1462_v51, %v95_v58  ;;  %vm128_vm9 = vweird.f32 %v1466_v59 }
 0x10b   :  { %v102_v3 = vmul.f32 %v1468_v60, %v88_v53  ;;  %vm108_vm5 = vweird.f32 %v1468_v60  ;;  %vm129_vm12 = vmor %vm127_vm8, %vm128_vm9  ;;  %v116_v28 = vmul.f32 %v1464_v57, %v115_v24 }
 0x10c   :  { %v123_v4 = vmul.f32 %v1466_v59, %v122_v61  ;;  %v100_v7 = vsel %vm99_vm4, %v1462_v51, %v96_v62  ;;  %vm109_vm7 = vmor %vm107_vm6, %vm108_vm5 }
 0x10d   :  { %v103_v6 = vmul.f32 %v1468_v60, %v102_v3  ;;  %v131_v12 = vmul.f32 %v100_v7, %v1669_v20 }
 0x10e   :  { %v124_v10 = vmul.f32 0.5, %v123_v4 }
 0x10f   :  { %v104_v9 = vmul.f32 0.5, %v103_v6  ;;  %v137_v22 = vmul.f32 %v1440_v13, %v131_v12 }
 0x110   :  { %v125_v17 = vsub.f32 1.5, %v124_v10 }
 0x111   :  { %v105_v11 = vsub.f32 1.5, %v104_v9  ;;  %v143_v26 = vadd.f32 %v1441_v23, %v137_v22 }
 0x112   :  { %v126_v25 = vmul.f32 %v1466_v59, %v125_v17 }
 0x113   :  { %v106_v16 = vmul.f32 %v1468_v60, %v105_v11 }
 0x114   :  { %v130_v32 = vsel %vm129_vm12, %v1466_v59, %v126_v25  ;;  %vm321_vm12 = vcmask 130048  }
 0x115   :  { %v110_v18 = vsel %vm109_vm7, %v1468_v60, %v106_v16  ;;  %v134_v33 = vmul.f32 %v130_v32, %v1680_v29 }
 0x116   :  { %v132_v21 = vmul.f32 %v110_v18, %v1683_v30  ;;  %v120_v30 = vsel %vm119_vm13, %v1464_v57, %v116_v28 }
 0x117   :  { %v133_v34 = vmul.f32 %v120_v30, %v1666_v19  ;;  %v140_v35 = vmul.f32 %v1440_v13, %v134_v33 }
 0x118   :  { %v138_v20 = vmul.f32 %v1440_v13, %v132_v21 }
 0x119   :  { %v139_v36 = vmul.f32 %v1440_v13, %v133_v34  ;;  %v146_v38 = vadd.f32 %v1441_v23, %v140_v35 }
 0x11a   :  { %v144_v27 = vadd.f32 %v1441_v23, %v138_v20 }
 0x11b   :  { %v145_v39 = vadd.f32 %v1441_v23, %v139_v36 }
 0x11c   :  { %v151_v31 = vpack.c.bf16 %v144_v27, %v143_v26 }
 0x11d   :  { %v152_v40 = vpack.c.bf16 %v146_v38, %v145_v39 }
 0x11e   :  { %1412 = vmatmul.msk.bf16.vlgmr.msra.gmra.mxu0 %vm39_vm0, %v151_v31 }
 0x12e   :  { %1413 = vmatmul.msk.bf16.gmra.mxu0 %vm39_vm0, %v152_v40 }
 0x19b   :  { %v1713_v41 = vpop.f32.mrf.mxu0 }
 0x19c   :  { %v180_v42 = vmul.f32 %v1713_v41, %v1713_v41  ;;  %v490_v44 = vpack.c.bf16 %v1713_v41, %v1713_v41 }
 0x19e   :  { %v184_v46 = vsel %vm39_vm0, %v180_v42, 0.0  ;;  %v229_v47 = vsel %vm228_vm14, %v180_v42, 0.0  ;;  %v1729_v50 = vunpack.c.l.b16 %v490_v44 }
 0x1a3   :  { %v1719_v45 = vpop.f32.mrf.mxu0 }
 0x1a4   :  { %v181_v19 = vmul.f32 %v1719_v45, %v1719_v45  ;;  %v491_v29 = vpack.c.bf16 %v1719_v45, %v1719_v45 }
 0x1a6   :  { %v185_v48 = vsel %vm39_vm0, %v181_v19, 0.0  ;;  %v230_v49 = vsel %vm228_vm14, %v181_v19, 0.0  ;;  %v1731_v51 = vunpack.c.l.b16 %v491_v29 }
 0x1a7   :  { %v186_v52 = vadd.f32 %v185_v48, %v184_v46  ;;  %v231_v53 = vadd.f32 %v230_v49, %v229_v47 }
 0x1a8   :  { %v506_v54 = vpack.c.b16 %v1731_v51, %v1729_v50 }
 0x1a9   :  { %v187_v55 = vrot.slane %v186_v52, 4  ;;  %v232_v56 = vrot.slane %v231_v53, 4 }
 0x1ab   :  { %v188_v57 = vadd.f32 %v187_v55, %v186_v52  ;;  %v233_v58 = vadd.f32 %v232_v56, %v231_v53  ;;  %v1735_v59 = vpop.f32.mrf.mxu0  ;;  %v1442_v52 = vld [vmem:[%s2168_s1 + $0x2] ss:$0 sm:$0xff] }
 0x1ac   :  { %v182_v6 = vmul.f32 %v1735_v59, %v1735_v59 }
 0x1ad   :  { %v189_v60 = vrot.slane %v188_v57, 2  ;;  %v234_v61 = vrot.slane %v233_v58, 2 }
 0x1ae   :  { %v193_v13 = vsel %vm39_vm0, %v182_v6, 0.0  ;;  %v238_v17 = vsel %vm228_vm14, %v182_v6, 0.0 }
 0x1af   :  { %v190_v62 = vadd.f32 %v189_v60, %v188_v57  ;;  %v235_v63 = vadd.f32 %v234_v61, %v233_v58 }
 0x1b1   :  { %v191_v3 = vrot.slane %v190_v62, 1  ;;  %v236_v4 = vrot.slane %v235_v63, 1 }
 0x1b3   :  { %v192_v7 = vadd.f32 %v191_v3, %v190_v62  ;;  %v237_v8 = vadd.f32 %v236_v4, %v235_v63  ;;  %v1739_v9 = vpop.f32.mrf.mxu0 }
 0x1b4   :  { %v183_v10 = vmul.f32 %v1739_v9, %v1739_v9 }
 0x1b5   :  { %v202_v11 = vmax.f32 %v192_v7, 1e-24  ;;  %v247_v12 = vmax.f32 %v237_v8, 1e-24 }
 0x1b6   :  { %v194_v15 = vsel %vm39_vm0, %v183_v10, 0.0  ;;  %v239_v16 = vsel %vm228_vm14, %v183_v10, 0.0 }
 0x1b7   :  { %1469 = vrsqrt.f32 %v202_v11  ;;  %v195_v18 = vadd.f32 %v194_v15, %v193_v13  ;;  %v240_v21 = vadd.f32 %v239_v16, %v238_v17  ;;  %vm210_vm2 = vweird.f32 %v202_v11 }
 0x1b8   :  { %1471 = vrsqrt.f32 %v247_v12  ;;  %vm255_vm4 = vweird.f32 %v247_v12 }
 0x1b9   :  { %v196_v22 = vrot.slane %v195_v18, 4  ;;  %v241_v23 = vrot.slane %v240_v21, 4 }
 0x1bb   :  { %v197_v24 = vadd.f32 %v196_v22, %v195_v18  ;;  %v242_v20 = vadd.f32 %v241_v23, %v240_v21 }
 0x1bd   :  { %v1470_v25 = vpop.eup %1469  ;;  %v198_v26 = vrot.slane %v197_v24, 2  ;;  %v243_v31 = vrot.slane %v242_v20, 2 }
 0x1be   :  { %v1472_v27 = vpop.eup %1471  ;;  %v205_v28 = vmul.f32 %v1470_v25, %v202_v11  ;;  %vm211_vm15 = vweird.f32 %v1470_v25 }
 0x1bf   :  { %v250_v32 = vmul.f32 %v1472_v27, %v247_v12  ;;  %v199_v30 = vadd.f32 %v198_v26, %v197_v24  ;;  %v244_v34 = vadd.f32 %v243_v31, %v242_v20  ;;  %vm256_vm1 = vweird.f32 %v1472_v27  ;;  %vm212_vm3 = vmor %vm210_vm2, %vm211_vm15 }
 0x1c0   :  { %v206_v33 = vmul.f32 %v1470_v25, %v205_v28  ;;  %vm257_vm5 = vmor %vm255_vm4, %vm256_vm1 }
 0x1c1   :  { %v251_v35 = vmul.f32 %v1472_v27, %v250_v32  ;;  %v200_v36 = vrot.slane %v199_v30, 1  ;;  %v245_v39 = vrot.slane %v244_v34, 1 }
 0x1c2   :  { %v207_v38 = vmul.f32 0.5, %v206_v33 }
 0x1c3   :  { %v252_v40 = vmul.f32 0.5, %v251_v35  ;;  %v201_v42 = vadd.f32 %v200_v36, %v199_v30  ;;  %v246_v19 = vadd.f32 %v245_v39, %v244_v34 }
 0x1c4   :  { %v208_v44 = vsub.f32 1.5, %v207_v38 }
 0x1c5   :  { %v253_v29 = vsub.f32 1.5, %v252_v40  ;;  %v203_v46 = vmax.f32 %v201_v42, 1e-24  ;;  %v248_v48 = vmax.f32 %v246_v19, 1e-24 }
 0x1c6   :  { %v209_v47 = vmul.f32 %v1470_v25, %v208_v44 }
 0x1c7   :  { %v254_v49 = vmul.f32 %v1472_v27, %v253_v29  ;;  %1473 = vrsqrt.f32 %v203_v46  ;;  %vm265_vm7 = vweird.f32 %v248_v48  ;;  %vm220_vm10 = vweird.f32 %v203_v46 }
 0x1c8   :  { %v213_v53 = vsel %vm212_vm3, %v1470_v25, %v209_v47  ;;  %1475 = vrsqrt.f32 %v248_v48 }
 0x1c9   :  { %v225_v55 = vmul.f32 %v213_v53, %v1719_v45  ;;  %v258_v56 = vsel %vm257_vm5, %v1472_v27, %v254_v49  ;;  %v224_v57 = vmul.f32 %v213_v53, %v1713_v41 }
 0x1ca   :  { %v270_v58 = vmul.f32 %v258_v56, %v1719_v45  ;;  %v269_v60 = vmul.f32 %v258_v56, %v1713_v41 }
 0x1cb   :  { %v275_v61 = vmul.f32 %v1442_v52, %v224_v57  ;;  %v276_v62 = vmul.f32 %v1442_v52, %v225_v55 }
 0x1cc   :  { %v284_v63 = vpack.c.bf16 %v270_v58, %v270_v58  ;;  %v283_v3 = vpack.c.bf16 %v269_v60, %v269_v60 }
 0x1cd   :  { %v1474_v4 = vpop.eup %1473  ;;  %v279_v6 = vpack.c.bf16 %v275_v61, %v275_v61  ;;  %v280_v7 = vpack.c.bf16 %v276_v62, %v276_v62  ;;  %v1764_v61 = vld [vmem:[#allocation2 + $0x60] sm:$0xff] }
 0x1ce   :  { %v1476_v8 = vpop.eup %1475  ;;  %v315_v10 = vunpack.c.l.b16 %v283_v3  ;;  %v316_v11 = vunpack.c.l.b16 %v284_v63  ;;  %v215_v12 = vmul.f32 %v1474_v4, %v203_v46  ;;  %vm221_vm9 = vweird.f32 %v1474_v4 }
 0x1cf   :  { %v260_v13 = vmul.f32 %v1476_v8, %v248_v48  ;;  %v293_v15 = vunpack.c.l.b16 %v279_v6  ;;  %v294_v16 = vunpack.c.l.b16 %v280_v7  ;;  %vm266_vm6 = vweird.f32 %v1476_v8  ;;  %vm222_vm11 = vmor %vm220_vm10, %vm221_vm9  ;;  %v1770_v7 = vld [vmem:[#allocation2 + $0x88] sm:$0xff] }
 0x1d0   :  { %v317_v17 = vpack.c.b16 %v316_v11, %v315_v10  ;;  %v216_v41 = vmul.f32 %v1474_v4, %v215_v12  ;;  %vm267_vm8 = vmor %vm265_vm7, %vm266_vm6  ;;  %vm856_vm10 = vcmask 785408  }
 0x1d1   :  { %v261_v18 = vmul.f32 %v1476_v8, %v260_v13  ;;  %v295_v21 = vpack.c.b16 %v294_v16, %v293_v15 }
 0x1d2   :  { %318 = vrot.lane.b32.xlu2 %v317_v17, %s1599_s8  ;;  %v217_v23 = vmul.f32 0.5, %v216_v41 }
 0x1d3   :  { %v262_v45 = vmul.f32 0.5, %v261_v18  ;;  %297 = vxpose.xlu0.c.b16.start.end [1/1] (short) (narrow) %v295_v21, 32 }
 0x1d4   :  { %v218_v27 = vsub.f32 1.5, %v217_v23 }
 0x1d5   :  { %v263_v22 = vsub.f32 1.5, %v262_v45 }
 0x1d6   :  { %v219_v33 = vmul.f32 %v1474_v4, %v218_v27 }
 0x1d7   :  { %v264_v24 = vmul.f32 %v1476_v8, %v263_v22 }
 0x1d8   :  { %v223_v35 = vsel %vm222_vm11, %v1474_v4, %v219_v33  ;;  %v1768_v4 = vld [vmem:[#allocation2 + $0x38] sm:$0xff] }
 0x1d9   :  { %v268_v20 = vsel %vm267_vm8, %v1476_v8, %v264_v24  ;;  %v227_v36 = vmul.f32 %v223_v35, %v1739_v9  ;;  %v226_v38 = vmul.f32 %v223_v35, %v1735_v59 }
 0x1da   :  { %v272_v25 = vmul.f32 %v268_v20, %v1739_v9  ;;  %v271_v26 = vmul.f32 %v268_v20, %v1735_v59 }
 0x1db   :  { %v277_v39 = vmul.f32 %v1442_v52, %v226_v38  ;;  %v278_v40 = vmul.f32 %v1442_v52, %v227_v36  ;;  %v1760_v52 = vld [vmem:[#allocation2 + $0x10] sm:$0xff] }
 0x1dc   :  { %v286_v28 = vpack.c.bf16 %v272_v25, %v272_v25  ;;  %v285_v31 = vpack.c.bf16 %v271_v26, %v271_v26 }
 0x1dd   :  { %v281_v42 = vpack.c.bf16 %v277_v39, %v277_v39  ;;  %v282_v44 = vpack.c.bf16 %v278_v40, %v278_v40 }
 0x1de   :  { %v371_v32 = vunpack.c.l.b16 %v285_v31  ;;  %v372_v30 = vunpack.c.l.b16 %v286_v28 }
 0x1df   :  { %v349_v19 = vunpack.c.l.b16 %v281_v42  ;;  %v350_v29 = vunpack.c.l.b16 %v282_v44 }
 0x1e0   :  { %v373_v34 = vpack.c.b16 %v372_v30, %v371_v32 }
 0x1e1   :  { %v351_v47 = vpack.c.b16 %v350_v29, %v349_v19 }
 0x1e2   :  { %374 = vrot.lane.b32.xlu1 %v373_v34, %s1599_s8 }
 0x1f8   :  { %353 = vxpose.xlu2.c.b16.start.end [1/1] (short) (narrow) %v351_v47, 32 }
 0x22c   :  { %v319_v48 = vpop.permute.xlu2 %318 }
 0x22d   :  { %335 = vmatpush.bf16.msra.mxu1 %v319_v48  ;;  %1428 = vmatpush.bf16.msra.mxu2 %v319_v48 }
 0x254   :  { %v375_v46 = vpop.permute.xlu1 %374 }
 0x255   :  { %390 = vmatpush.bf16.msrb.mxu2 %v375_v46 }
 0x27f   :  { %v305_v49 = vpop.trf.xlu0 }
 0x280   :  { %1414 = vmatmul.msk.bf16.vlgmr.msra.gmra.mxu1 %vm321_vm12, %v305_v49 }
 0x28f   :  { %v306_v53 = vpop.trf.xlu0 }
 0x290   :  { %1415 = vmatmul.msk.bf16.vlgmr.msra.gmra.mxu2 %vm321_vm12, %v306_v53 }
 0x299   :  { %v361_v55 = vpop.trf.xlu2 }
 0x2a0   :  { %1416 = vmatmul.msk.bf16.vlgmr.msrb.gmra.mxu2 %vm321_vm12, %v361_v55 }
 0x2a9   :  { %v362_v56 = vpop.trf.xlu2 }
 0x2b0   :  { %1417 = vmatmul.msk.bf16.gmra.mxu2 %vm321_vm12, %v362_v56 }
 0x2fd   :  { %v337_v57 = vpop.f32.mrf.mxu1 }
 0x2fe   :  { %v338_v58 = vadd.f32 %v337_v57, %v1760_v52 }
 0x300   :  { %v402_v60 = vsel %vm39_vm0, %v338_v58, -inf }
 0x301   :  { %403 = vmax.xlane.f32.xlu2 %v402_v60 }
 0x305   :  { %v339_v6 = vpop.f32.mrf.mxu1 }
 0x306   :  { %v340_v8 = vadd.f32 %v339_v6, %v1768_v4 }
 0x308   :  { %v405_v13 = vsel %vm39_vm0, %v340_v8, -inf }
 0x313   :  { %v342_v62 = vpop.f32.mrf.mxu2 }
 0x314   :  { %v343_v63 = vadd.f32 %v342_v62, %v1764_v61 }
 0x316   :  { %v408_v3 = vsel %vm39_vm0, %v343_v63, -inf }
 0x317   :  { %409 = vmax.xlane.f32.xlu1 %v408_v3 }
 0x319   :  { %596 = vrot.lane.b32.xlu2 %v1691_v37, %s1601_s10 }
 0x31b   :  { %v344_v10 = vpop.f32.mrf.mxu2 }
 0x31c   :  { %v345_v11 = vadd.f32 %v344_v10, %v1770_v7 }
 0x31e   :  { %v411_v12 = vsel %vm39_vm0, %v345_v11, -inf }
 0x31f   :  { %412 = vmax.xlane.f32.xlu0 %v411_v12  ;;  %406 = vmax.xlane.f32.xlu1 %v405_v13 }
 0x323   :  { %v392_v15 = vpop.f32.mrf.mxu2 }
 0x324   :  { %v393_v16 = vadd.f32 %v392_v15, %v1760_v52 }
 0x326   :  { %v414_v17 = vsel %vm39_vm0, %v393_v16, -inf }
 0x327   :  { %415 = vmax.xlane.f32.xlu1 %v414_v17  ;;  %v492_v17 = vpack.c.bf16 %v1735_v59, %v1735_v59 }
 0x32b   :  { %v394_v18 = vpop.f32.mrf.mxu2 }
 0x32c   :  { %v395_v21 = vadd.f32 %v394_v18, %v1768_v4 }
 0x32e   :  { %v417_v41 = vsel %vm39_vm0, %v395_v21, -inf }
 0x32f   :  { %418 = vmax.xlane.f32.xlu1 %v417_v41 }
 0x333   :  { %v397_v45 = vpop.f32.mrf.mxu2  ;;  %507 = vrot.lane.b32.xlu0 %v506_v54, %s1600_s9 }
 0x334   :  { %v398_v22 = vadd.f32 %v397_v45, %v1764_v61 }
 0x336   :  { %v420_v23 = vsel %vm39_vm0, %v398_v22, -inf }
 0x337   :  { %421 = vmax.xlane.f32.xlu1 %v420_v23 }
 0x33b   :  { %v399_v24 = vpop.f32.mrf.mxu2  ;;  %594 = vrot.lane.b32.xlu0 %v1695_v43, %s1601_s10 }
 0x33c   :  { %v400_v20 = vadd.f32 %v399_v24, %v1770_v7 }
 0x33e   :  { %v423_v25 = vsel %vm39_vm0, %v400_v20, -inf }
 0x33f   :  { %424 = vmax.xlane.f32.xlu1 %v423_v25 }
 0x374   :  { %v404_v26 = vpop.xlane.xlu2 %403 }
 0x375   :  { %v426_v27 = vsub.f32 %v338_v58, %v404_v26 }
 0x377   :  { %v434_v28 = vmul.f32 1.442695, %v426_v27 }
 0x379   :  { %1477 = vpow2.f32 %v434_v28 }
 0x37f   :  { %v1788_v31 = vpop.eup %1477 }
 0x380   :  { %v450_v50 = vsel %vm39_vm0, %v1788_v31, 0.0 }
 0x381   :  { %451 = vadd.xlane.f32.xlu1 %v450_v50 }
 0x38a   :  { %v410_v51 = vpop.xlane.xlu1 %409 }
 0x38b   :  { %v428_v54 = vsub.f32 %v343_v63, %v410_v51 }
 0x38d   :  { %v438_v32 = vmul.f32 1.442695, %v428_v54 }
 0x38f   :  { %1479 = vpow2.f32 %v438_v32 }
 0x392   :  { %v407_v30 = vpop.xlane.xlu1 %406  ;;  %v413_v33 = vpop.xlane.xlu0 %412 }
 0x393   :  { %v427_v34 = vsub.f32 %v340_v8, %v407_v30  ;;  %v429_v38 = vsub.f32 %v345_v11, %v413_v33 }
 0x395   :  { %v1480_v35 = vpop.eup %1479  ;;  %v436_v36 = vmul.f32 1.442695, %v427_v34  ;;  %v440_v40 = vmul.f32 1.442695, %v429_v38 }
 0x396   :  { %v456_v39 = vsel %vm39_vm0, %v1480_v35, 0.0 }
 0x397   :  { %457 = vadd.xlane.f32.xlu1 %v456_v39  ;;  %1481 = vpow2.f32 %v436_v36 }
 0x398   :  { %1483 = vpow2.f32 %v440_v40 }
 0x39a   :  { %v416_v42 = vpop.xlane.xlu1 %415 }
 0x39b   :  { %v430_v19 = vsub.f32 %v393_v16, %v416_v42  ;;  %v493_v16 = vpack.c.bf16 %v1739_v9, %v1739_v9 }
 0x39d   :  { %v1482_v44 = vpop.eup %1481  ;;  %v442_v47 = vmul.f32 1.442695, %v430_v19  ;;  %v545_v18 = vunpack.c.l.b16 %v493_v16 }
 0x39e   :  { %v453_v29 = vsel %vm39_vm0, %v1482_v44, 0.0  ;;  %v1484_v46 = vpop.eup %1483 }
 0x39f   :  { %454 = vadd.xlane.f32.xlu1 %v453_v29  ;;  %1485 = vpow2.f32 %v442_v47  ;;  %v459_v53 = vsel %vm39_vm0, %v1484_v46, 0.0 }
 0x3a2   :  { %v419_v48 = vpop.xlane.xlu1 %418 }
 0x3a3   :  { %v431_v49 = vsub.f32 %v395_v21, %v419_v48  ;;  %v544_v21 = vunpack.c.l.b16 %v492_v17 }
 0x3a5   :  { %v444_v55 = vmul.f32 1.442695, %v431_v49  ;;  %v1795_v57 = vpop.eup %1485  ;;  %v546_v41 = vpack.c.b16 %v545_v18, %v544_v21 }
 0x3a6   :  { %v462_v60 = vsel %vm39_vm0, %v1795_v57, 0.0 }
 0x3a7   :  { %460 = vadd.xlane.f32.xlu1 %v459_v53  ;;  %1487 = vpow2.f32 %v444_v55 }
 0x3aa   :  { %v422_v56 = vpop.xlane.xlu1 %421 }
 0x3ab   :  { %v432_v58 = vsub.f32 %v398_v22, %v422_v56 }
 0x3ad   :  { %v446_v62 = vmul.f32 1.442695, %v432_v58  ;;  %v1799_v3 = vpop.eup %1487 }
 0x3ae   :  { %v465_v8 = vsel %vm39_vm0, %v1799_v3, 0.0 }
 0x3af   :  { %463 = vadd.xlane.f32.xlu1 %v462_v60  ;;  %1489 = vpow2.f32 %v446_v62 }
 0x3b2   :  { %v425_v63 = vpop.xlane.xlu1 %424 }
 0x3b3   :  { %v433_v6 = vsub.f32 %v400_v20, %v425_v63 }
 0x3b5   :  { %v448_v10 = vmul.f32 1.442695, %v433_v6  ;;  %v1490_v11 = vpop.eup %1489 }
 0x3b6   :  { %v468_v12 = vsel %vm39_vm0, %v1490_v11, 0.0 }
 0x3b7   :  { %466 = vadd.xlane.f32.xlu1 %v465_v8  ;;  %1491 = vpow2.f32 %v448_v10 }
 0x3bd   :  { %v1492_v13 = vpop.eup %1491 }
 0x3be   :  { %v471_v15 = vsel %vm39_vm0, %v1492_v13, 0.0 }
 0x3bf   :  { %469 = vadd.xlane.f32.xlu1 %v468_v12 }
 0x3c7   :  { %472 = vadd.xlane.f32.xlu1 %v471_v15 }
 0x3e0   :  { %547 = vrot.lane.b32.xlu1 %v546_v41, %s1600_s9 }
 0x3f4   :  { %v452_v45 = vpop.xlane.xlu1 %451 }
 0x40a   :  { %v458_v22 = vpop.xlane.xlu1 %457 }
 0x40b   :  { %1493 = vrcp.f32 %v458_v22 }
 0x411   :  { %v1494_v24 = vpop.eup %1493 }
 0x412   :  { %v455_v23 = vpop.xlane.xlu1 %454  ;;  %v484_v37 = vmul.f32 %v1494_v24, %v1480_v35  ;;  %v1444_v24 = vld [vmem:[%s2168_s1 + $0x4] ss:$0 sm:$0xff] }
 0x413   :  { %1495 = vrcp.f32 %v455_v23 }
 0x414   :  { %1497 = vrcp.f32 %v452_v45  ;;  %v496_v27 = vpack.c.bf16 %v484_v37, %v484_v37 }
 0x416   :  { %v515_v54 = vunpack.c.l.b16 %v496_v27 }
 0x419   :  { %v1496_v20 = vpop.eup %1495 }
 0x41a   :  { %v461_v43 = vpop.xlane.xlu1 %460  ;;  %v1498_v9 = vpop.eup %1497  ;;  %v483_v28 = vmul.f32 %v1496_v20, %v1482_v44 }
 0x41b   :  { %1499 = vrcp.f32 %v461_v43  ;;  %v482_v51 = vmul.f32 %v1498_v9, %v1788_v31  ;;  %v508_v44 = vpop.permute.xlu0 %507  ;;  %v1443_v43 = vld [vmem:[%s2168_s1 + $0x3] ss:$0 sm:$0xff] }
 0x41c   :  { %v495_v30 = vpack.c.bf16 %v483_v28, %v483_v28 }
 0x41d   :  { %v494_v34 = vpack.c.bf16 %v482_v51, %v482_v51 }
 0x41e   :  { %v514_v39 = vunpack.c.l.b16 %v495_v30 }
 0x41f   :  { %v513_v35 = vunpack.c.l.b16 %v494_v34 }
 0x421   :  { %v1500_v25 = vpop.eup %1499  ;;  %v517_v40 = vpack.c.b16 %v514_v39, %v513_v35 }
 0x422   :  { %v464_v26 = vpop.xlane.xlu1 %463  ;;  %v485_v59 = vmul.f32 %v1500_v25, %v1484_v46 }
 0x423   :  { %v523_v19 = vsel %vm39_vm0, %v517_v40, 0 }
 0x424   :  { %v497_v50 = vpack.c.bf16 %v485_v59, %v485_v59 }
 0x426   :  { %v516_v32 = vunpack.c.l.b16 %v497_v50 }
 0x428   :  { %v518_v33 = vpack.c.b16 %v516_v32, %v515_v54 }
 0x42a   :  { %v467_v36 = vpop.xlane.xlu1 %466  ;;  %v526_v38 = vsel %vm39_vm0, %v518_v33, 0 }
 0x42b   :  { %534 = vmatpush.bf16.xpose.msra.mxu3 %v526_v38 }
 0x432   :  { %v470_v42 = vpop.xlane.xlu1 %469 }
 0x433   :  { %535 = vmatpush.bf16.xpose.msra.mxu3 %v523_v19  ;;  %1501 = vrcp.f32 %v470_v42 }
 0x434   :  { %1503 = vrcp.f32 %v467_v36 }
 0x435   :  { %1505 = vrcp.f32 %v464_v26 }
 0x439   :  { %v1502_v29 = vpop.eup %1501 }
 0x43a   :  { %1418 = vmatmul.msk.bf16.vlgmr.msra.gmra.mxu3 %vm39_vm0, %v508_v44  ;;  %v473_v31 = vpop.xlane.xlu1 %472  ;;  %v488_v47 = vmul.f32 %v1502_v29, %v1490_v11  ;;  %v1504_v48 = vpop.eup %1503 }
 0x43b   :  { %1507 = vrcp.f32 %v473_v31  ;;  %v1506_v46 = vpop.eup %1505  ;;  %v487_v56 = vmul.f32 %v1504_v48, %v1799_v3  ;;  %v597_v3 = vpop.permute.xlu2 %596 }
 0x43c   :  { %v500_v55 = vpack.c.bf16 %v488_v47, %v488_v47  ;;  %v486_v60 = vmul.f32 %v1506_v46, %v1795_v57  ;;  %612 = vmatpush.bf16.msrb.mxu1 %v597_v3  ;;  %v595_v57 = vpop.permute.xlu0 %594  ;;  %v645_v3 = vld [vmem:[#allocation2 + $0x90] sm:$0xff] }
 0x43d   :  { %v499_v6 = vpack.c.bf16 %v487_v56, %v487_v56 }
 0x43e   :  { %v555_v62 = vunpack.c.l.b16 %v500_v55  ;;  %v498_v10 = vpack.c.bf16 %v486_v60, %v486_v60 }
 0x43f   :  { %v554_v15 = vunpack.c.l.b16 %v499_v6  ;;  %v636_v6 = vld [vmem:[#allocation2 + $0x18] sm:$0xff] }
 0x440   :  { %v553_v11 = vunpack.c.l.b16 %v498_v10  ;;  %613 = vmatpush.bf16.msrb.mxu1 %v595_v57  ;;  %v643_v57 = vld [vmem:[#allocation2 + $0x70] sm:$0xff] }
 0x441   :  { %v1508_v49 = vpop.eup %1507 }
 0x442   :  { %v489_v53 = vmul.f32 %v1508_v49, %v1492_v13  ;;  %v557_v16 = vpack.c.b16 %v554_v15, %v553_v11  ;;  %v640_v15 = vld [vmem:[#allocation2 + $0x48] sm:$0xff]  ;;  %v812_v11 = vpack.c.bf16 %v1768_v4, %v1760_v52 }
 0x444   :  { %v501_v58 = vpack.c.bf16 %v489_v53, %v489_v53  ;;  %v563_v17 = vsel %vm39_vm0, %v557_v16, 0 }
 0x446   :  { %v556_v63 = vunpack.c.l.b16 %v501_v58 }
 0x448   :  { %v558_v8 = vpack.c.b16 %v556_v63, %v555_v62 }
 0x44a   :  { %v566_v12 = vsel %vm39_vm0, %v558_v8, 0  ;;  %v639_v8 = vld [vmem:[#allocation2 + $0x40] sm:$0xff] }
 0x44b   :  { %574 = vmatpush.bf16.xpose.msrb.mxu3 %v566_v12  ;;  %v813_v10 = vpack.c.bf16 %v639_v8, %v636_v6  ;;  %v637_v12 = vld [vmem:[#allocation2 + $0x20] sm:$0xff] }
 0x44c   :  { %v814_v16 = vpack.c.bf16 %v640_v15, %v637_v12 }
 0x452   :  { %v548_v13 = vpop.permute.xlu1 %547 }
 0x453   :  { %575 = vmatpush.bf16.xpose.msrb.mxu3 %v563_v17  ;;  %v815_v17 = vpack.c.bf16 %v1770_v7, %v1764_v61 }
 0x45a   :  { %1419 = vmatmul.msk.bf16.vlgmr.msrb.gmra.mxu3 %vm39_vm0, %v548_v13  ;;  %v642_v13 = vld [vmem:[#allocation2 + $0x68] sm:$0xff] }
 0x4bd   :  { %v537_v18 = vpop.f32.mrf.mxu3 }
 0x4c5   :  { %v539_v21 = vpop.f32.mrf.mxu3 }
 0x4c6   :  { %v586_v41 = vpack.c.bf16 %v539_v21, %v537_v18  ;;  %v646_v18 = vld [vmem:[#allocation2 + $0x98] sm:$0xff]  ;;  %v816_v21 = vpack.c.bf16 %v645_v3, %v642_v13 }
 0x4c8   :  { %1420 = vmatmul.msk.bf16.vlgmr.msrb.gmra.mxu1 %vm39_vm0, %v586_v41  ;;  %v817_v41 = vpack.c.bf16 %v646_v18, %v643_v57 }
 0x4dd   :  { %v577_v45 = vpop.f32.mrf.mxu3 }
 0x4e5   :  { %v579_v22 = vpop.f32.mrf.mxu3 }
 0x4e6   :  { %v587_v23 = vpack.c.bf16 %v579_v22, %v577_v45 }
 0x4e8   :  { %1421 = vmatmul.msk.bf16.gmra.mxu1 %vm39_vm0, %v587_v23 }
 0x545   :  { %v615_v37 = vpop.f32.mrf.mxu1 }
 0x546   :  { %v616_v20 = vadd.f32 %v1443_v43, %v615_v37 }
 0x548   :  { %v627_v9 = vmul.f32 %v1444_v24, %v616_v20 }
 0x54a   :  { %v1830_v25 = vadd.f32 %v627_v9, %v1641_v1 }
 0x54c   :  { %v647_v26 = vsel %vm39_vm0, %v1830_v25, 0.0 }
 0x54d   :  { %648 = vadd.xlane.f32.xlu2 %v647_v26  ;;  %v617_v59 = vpop.f32.mrf.mxu1 }
 0x54e   :  { %v618_v50 = vadd.f32 %v1443_v43, %v617_v59 }
 0x550   :  { %v628_v32 = vmul.f32 %v1444_v24, %v618_v50 }
 0x552   :  { %v1840_v34 = vadd.f32 %v628_v32, %v1655_v5 }
 0x565   :  { %v620_v27 = vpop.f32.mrf.mxu1 }
 0x566   :  { %v621_v28 = vadd.f32 %v1443_v43, %v620_v27 }
 0x568   :  { %v629_v51 = vmul.f32 %v1444_v24, %v621_v28 }
 0x56a   :  { %v1835_v54 = vadd.f32 %v629_v51, %v1636_v0  ;;  %v650_v0 = vsel %vm39_vm0, %v1840_v34, 0.0 }
 0x56c   :  { %v653_v30 = vsel %vm39_vm0, %v1835_v54, 0.0 }
 0x56d   :  { %v622_v33 = vpop.f32.mrf.mxu1  ;;  %654 = vadd.xlane.f32.xlu1 %v653_v30 }
 0x56e   :  { %v623_v1 = vadd.f32 %v1443_v43, %v622_v33 }
 0x570   :  { %v630_v36 = vmul.f32 %v1444_v24, %v623_v1 }
 0x572   :  { %v1843_v38 = vadd.f32 %v630_v36, %v1646_v2 }
 0x574   :  { %v656_v39 = vsel %vm39_vm0, %v1843_v38, 0.0 }
 0x575   :  { %657 = vadd.xlane.f32.xlu0 %v656_v39  ;;  %651 = vadd.xlane.f32.xlu1 %v650_v0 }
 0x5c0   :  { %v649_v35 = vpop.xlane.xlu2 %648 }
 0x5c1   :  { %v659_v19 = vmul.f32 %v649_v35, %v1661_v14 }
 0x5c3   :  { %v1857_v44 = vsub.f32 %v1830_v25, %v659_v19 }
 0x5c5   :  { %v667_v55 = vmul.f32 %v1857_v44, %v1857_v44 }
 0x5c7   :  { %v671_v62 = vsel %vm39_vm0, %v667_v55, 0.0 }
 0x5e0   :  { %v655_v40 = vpop.xlane.xlu1 %654 }
 0x5e1   :  { %v661_v42 = vmul.f32 %v655_v40, %v1661_v14 }
 0x5e3   :  { %v1852_v5 = vsub.f32 %v1835_v54, %v661_v42 }
 0x5e5   :  { %v669_v2 = vmul.f32 %v1852_v5, %v1852_v5 }
 0x5e7   :  { %v677_v31 = vsel %vm39_vm0, %v669_v2, 0.0 }
 0x5e8   :  { %v658_v29 = vpop.xlane.xlu0 %657  ;;  %678 = vadd.xlane.f32.xlu0 %v677_v31  ;;  %v652_v47 = vpop.xlane.xlu1 %651  ;;  %v1445_v31 = vld [vmem:[%s2168_s1 + $0x5] ss:$0 sm:$0xff] }
 0x5e9   :  { %v662_v48 = vmul.f32 %v658_v29, %v1661_v14  ;;  %v660_v46 = vmul.f32 %v652_v47, %v1661_v14 }
 0x5eb   :  { %v1863_v49 = vsub.f32 %v1843_v38, %v662_v48  ;;  %v1866_v53 = vsub.f32 %v1840_v34, %v660_v46  ;;  %v1898_v46 = vld [vmem:[%s2168_s1 + $0x10] sm:$0xff] }
 0x5ed   :  { %v670_v56 = vmul.f32 %v1863_v49, %v1863_v49  ;;  %v668_v58 = vmul.f32 %v1866_v53, %v1866_v53 }
 0x5ef   :  { %v680_v60 = vsel %vm39_vm0, %v670_v56, 0.0  ;;  %v674_v63 = vsel %vm39_vm0, %v668_v58, 0.0 }
 0x5f0   :  { %681 = vadd.xlane.f32.xlu1 %v680_v60  ;;  %672 = vadd.xlane.f32.xlu0 %v671_v62  ;;  %v753_v62 = vrot.slane %v1898_v46, 3 }
 0x5f1   :  { %675 = vadd.xlane.f32.xlu2 %v674_v63  ;;  %v1446_v63 = vld [vmem:[%s2168_s1 + $0x6] ss:$0 sm:$0xff] }
 0x5f2   :  { %v761_v18 = vperm.slane %v753_v62, 0 }
 0x604   :  { %846 = vrot.lane.b32.xlu0 %v813_v10, %s1599_s8 }
 0x609   :  { %844 = vrot.lane.b32.xlu1 %v812_v11, %s1599_s8  ;;  %848 = vrot.lane.b32.xlu2 %v814_v16, %s1599_s8 }
 0x60c   :  { %850 = vrot.lane.b32.xlu0 %v815_v17, %s1599_s8 }
 0x611   :  { %852 = vrot.lane.b32.xlu1 %v816_v21, %s1599_s8  ;;  %854 = vrot.lane.b32.xlu2 %v817_v41, %s1599_s8 }
 0x65b   :  { %v679_v52 = vpop.xlane.xlu0 %678 }
 0x65c   :  { %v685_v4 = vmul.f32 %v679_v52, %v1661_v14  ;;  %v1447_v52 = vld [vmem:[%s2168_s1 + $0x18] ss:$0 sm:$0xff] }
 0x65e   :  { %v689_v61 = vadd.f32 1e-05, %v685_v4 }
 0x660   :  { %1509 = vrsqrt.f32 %v689_v61  ;;  %vm717_vm14 = vweird.f32 %v689_v61 }
 0x663   :  { %v673_v7 = vpop.xlane.xlu0 %672  ;;  %v682_v45 = vpop.xlane.xlu1 %681 }
 0x664   :  { %v683_v22 = vmul.f32 %v673_v7, %v1661_v14  ;;  %v676_v23 = vpop.xlane.xlu2 %675  ;;  %v686_v43 = vmul.f32 %v682_v45, %v1661_v14  ;;  %v752_v7 = vrot.slane %v1898_v46, 2  ;;  %v756_v45 = vrot.slane %v1898_v46, 6 }
 0x665   :  { %v684_v24 = vmul.f32 %v676_v23, %v1661_v14 }
 0x666   :  { %v1510_v37 = vpop.eup %1509  ;;  %v687_v20 = vadd.f32 1e-05, %v683_v22  ;;  %v690_v9 = vadd.f32 1e-05, %v686_v43 }
 0x667   :  { %v712_v26 = vmul.f32 %v1510_v37, %v689_v61  ;;  %v688_v59 = vadd.f32 1e-05, %v684_v24  ;;  %vm718_vm13 = vweird.f32 %v1510_v37 }
 0x668   :  { %1511 = vrsqrt.f32 %v687_v20  ;;  %vm719_vm15 = vmor %vm717_vm14, %vm718_vm13  ;;  %vm697_vm3 = vweird.f32 %v687_v20  ;;  %vm727_vm8 = vweird.f32 %v690_v9 }
 0x669   :  { %v713_v27 = vmul.f32 %v1510_v37, %v712_v26  ;;  %1513 = vrsqrt.f32 %v688_v59  ;;  %vm707_vm6 = vweird.f32 %v688_v59 }
 0x66a   :  { %1515 = vrsqrt.f32 %v690_v9 }
 0x66b   :  { %v714_v28 = vmul.f32 0.5, %v713_v27 }
 0x66d   :  { %v715_v50 = vsub.f32 1.5, %v714_v28 }
 0x66e   :  { %v1512_v51 = vpop.eup %1511 }
 0x66f   :  { %v1514_v32 = vpop.eup %1513  ;;  %v716_v30 = vmul.f32 %v1510_v37, %v715_v50  ;;  %v692_v33 = vmul.f32 %v1512_v51, %v687_v20  ;;  %vm698_vm1 = vweird.f32 %v1512_v51 }
 0x670   :  { %v1516_v1 = vpop.eup %1515  ;;  %v702_v36 = vmul.f32 %v1514_v32, %v688_v59  ;;  %vm708_vm2 = vweird.f32 %v1514_v32  ;;  %vm699_vm5 = vmor %vm697_vm3, %vm698_vm1 }
 0x671   :  { %v693_v39 = vmul.f32 %v1512_v51, %v692_v33  ;;  %v722_v0 = vmul.f32 %v1516_v1, %v690_v9  ;;  %v720_v35 = vsel %vm719_vm15, %v1510_v37, %v716_v30  ;;  %vm728_vm4 = vweird.f32 %v1516_v1  ;;  %vm709_vm7 = vmor %vm707_vm6, %vm708_vm2 }
 0x672   :  { %v703_v40 = vmul.f32 %v1514_v32, %v702_v36  ;;  %v733_v29 = vmul.f32 %v720_v35, %v1852_v5  ;;  %v757_v5 = vrot.slane %v1898_v46, 7  ;;  %vm729_vm9 = vmor %vm727_vm8, %vm728_vm4  ;;  %v764_v30 = vperm.slane %v756_v45, 0 }
 0x673   :  { %v694_v42 = vmul.f32 0.5, %v693_v39  ;;  %v723_v19 = vmul.f32 %v1516_v1, %v722_v0 }
 0x674   :  { %v704_v2 = vmul.f32 0.5, %v703_v40  ;;  %v739_v6 = vmul.f32 %v1445_v31, %v733_v29  ;;  %v765_v21 = vperm.slane %v757_v5, 0 }
 0x675   :  { %v695_v47 = vsub.f32 1.5, %v694_v42  ;;  %v724_v48 = vmul.f32 0.5, %v723_v19  ;;  %v751_v42 = vrot.slane %v1898_v46, 1  ;;  %v755_v19 = vrot.slane %v1898_v46, 5 }
 0x676   :  { %v705_v55 = vsub.f32 1.5, %v704_v2  ;;  %v1908_v3 = vadd.f32 %v1446_v63, %v739_v6 }
 0x677   :  { %v696_v56 = vmul.f32 %v1512_v51, %v695_v47  ;;  %v725_v58 = vsub.f32 1.5, %v724_v48 }
 0x678   :  { %v706_v60 = vmul.f32 %v1514_v32, %v705_v55  ;;  %v810_v43 = vmul.f32 %v1447_v52, %v1908_v3  ;;  %v802_v40 = vmul.f32 %v764_v30, %v1908_v3 }
 0x679   :  { %v700_v8 = vsel %vm699_vm5, %v1512_v51, %v696_v56  ;;  %v726_v10 = vmul.f32 %v1516_v1, %v725_v58  ;;  %v1943_v56 = vpop.permute.xlu2 %848  ;;  %v759_v58 = vperm.slane %v751_v42, 0 }
 0x67a   :  { %v731_v12 = vmul.f32 %v700_v8, %v1857_v44  ;;  %v710_v15 = vsel %vm709_vm7, %v1514_v32, %v706_v60  ;;  %v760_v32 = vperm.slane %v752_v7, 0  ;;  %v763_v60 = vperm.slane %v755_v19, 0 }
 0x67b   :  { %v732_v11 = vmul.f32 %v710_v15, %v1866_v53  ;;  %v730_v16 = vsel %vm729_vm9, %v1516_v1, %v726_v10  ;;  %v790_v53 = vmul.f32 %v761_v18, %v1908_v3  ;;  %v782_v8 = vmul.f32 %v759_v58, %v1908_v3 }
 0x67c   :  { %v737_v17 = vmul.f32 %v1445_v31, %v731_v12  ;;  %v734_v13 = vmul.f32 %v730_v16, %v1863_v49  ;;  %v806_v49 = vmul.f32 %v765_v21, %v1908_v3  ;;  %v786_v35 = vmul.f32 %v760_v32, %v1908_v3 }
 0x67d   :  { %v738_v57 = vmul.f32 %v1445_v31, %v732_v11  ;;  %v798_v10 = vmul.f32 %v763_v60, %v1908_v3  ;;  %v754_v12 = vrot.slane %v1898_v46, 4 }
 0x67e   :  { %v740_v41 = vmul.f32 %v1445_v31, %v734_v13  ;;  %v1913_v4 = vadd.f32 %v1446_v63, %v737_v17 }
 0x67f   :  { %v1915_v44 = vadd.f32 %v1446_v63, %v738_v57 }
 0x680   :  { %v1917_v61 = vadd.f32 %v1446_v63, %v740_v41  ;;  %v788_v37 = vmul.f32 %v761_v18, %v1913_v4  ;;  %v804_v9 = vmul.f32 %v765_v21, %v1913_v4  ;;  %v808_v50 = vmul.f32 %v1447_v52, %v1913_v4 }
 0x681   :  { %v789_v20 = vmul.f32 %v761_v18, %v1915_v44  ;;  %v805_v28 = vmul.f32 %v765_v21, %v1915_v44  ;;  %v809_v51 = vmul.f32 %v1447_v52, %v1915_v44  ;;  %v784_v31 = vmul.f32 %v760_v32, %v1913_v4 }
 0x682   :  { %v791_v22 = vmul.f32 %v761_v18, %v1917_v61  ;;  %v807_v23 = vmul.f32 %v765_v21, %v1917_v61  ;;  %v811_v24 = vmul.f32 %v1447_v52, %v1917_v61  ;;  %v787_v33 = vmul.f32 %v760_v32, %v1917_v61 }
 0x683   :  { %v824_v1 = vpack.c.bf16 %v789_v20, %v788_v37  ;;  %v832_v36 = vpack.c.bf16 %v805_v28, %v804_v9  ;;  %v803_v39 = vmul.f32 %v764_v30, %v1917_v61  ;;  %v834_v0 = vpack.c.bf16 %v809_v51, %v808_v50  ;;  %v1965_v20 = vpop.permute.xlu2 %854  ;;  %v845_v9 = vpop.permute.xlu1 %844 }
 0x684   :  { %v825_v26 = vpack.c.bf16 %v791_v22, %v790_v53  ;;  %v833_v59 = vpack.c.bf16 %v807_v23, %v806_v49  ;;  %v835_v27 = vpack.c.bf16 %v811_v24, %v810_v43  ;;  %v823_v2 = vpack.c.bf16 %v787_v33, %v786_v35 }
 0x685   :  { %v831_v29 = vpack.c.bf16 %v803_v39, %v802_v40  ;;  %v785_v47 = vmul.f32 %v760_v32, %v1915_v44  ;;  %v800_v48 = vmul.f32 %v764_v30, %v1913_v4  ;;  %v801_v55 = vmul.f32 %v764_v30, %v1915_v44  ;;  %v1448_v32 = vld [vmem:[%s2168_s1 + $0x7] ss:$0 sm:$0xff] }
 0x686   :  { %871 = vmatpush.bf16.msra.mxu2 %v825_v26  ;;  %890 = vmatpush.bf16.msrb.mxu0 %v833_v59  ;;  %v783_v63 = vmul.f32 %v759_v58, %v1917_v61  ;;  %v799_v6 = vmul.f32 %v763_v60, %v1917_v61  ;;  %v780_v15 = vmul.f32 %v759_v58, %v1913_v4  ;;  %v758_v18 = vperm.slane %v1898_v46, 0 }
 0x687   :  { %915 = vmatpush.bf16.msra.mxu3 %v835_v27  ;;  %v822_v62 = vpack.c.bf16 %v785_v47, %v784_v31  ;;  %v830_v5 = vpack.c.bf16 %v801_v55, %v800_v48  ;;  %v781_v11 = vmul.f32 %v759_v58, %v1915_v44  ;;  %v796_v13 = vmul.f32 %v763_v60, %v1913_v4 }
 0x688   :  { %v821_v16 = vpack.c.bf16 %v783_v63, %v782_v8  ;;  %v829_v17 = vpack.c.bf16 %v799_v6, %v798_v10  ;;  %v797_v57 = vmul.f32 %v763_v60, %v1915_v44  ;;  %v762_v21 = vperm.slane %v754_v12, 0 }
 0x689   :  { %v820_v41 = vpack.c.bf16 %v781_v11, %v780_v15  ;;  %v779_v53 = vmul.f32 %v758_v18, %v1917_v61  ;;  %v778_v7 = vmul.f32 %v758_v18, %v1908_v3  ;;  %v776_v22 = vmul.f32 %v758_v18, %v1913_v4 }
 0x68a   :  { %872 = vmatpush.bf16.msra.mxu2 %v824_v1  ;;  %891 = vmatpush.bf16.msrb.mxu0 %v832_v36  ;;  %v828_v52 = vpack.c.bf16 %v797_v57, %v796_v13  ;;  %v795_v49 = vmul.f32 %v762_v21, %v1917_v61  ;;  %v794_v45 = vmul.f32 %v762_v21, %v1908_v3  ;;  %v847_v61 = vpop.permute.xlu0 %846 }
 0x68b   :  { %916 = vmatpush.bf16.msra.mxu3 %v834_v0  ;;  %v777_v23 = vmul.f32 %v758_v18, %v1915_v44  ;;  %v819_v43 = vpack.c.bf16 %v779_v53, %v778_v7  ;;  %v792_v46 = vmul.f32 %v762_v21, %v1913_v4  ;;  %v793_v37 = vmul.f32 %v762_v21, %v1915_v44  ;;  %v853_v27 = vpop.permute.xlu1 %852 }
 0x68c   :  { %v827_v24 = vpack.c.bf16 %v795_v49, %v794_v45  ;;  %v1969_v59 = vsel %vm856_vm10, %v845_v9, %v847_v61  ;;  %v1972_v4 = vsel %vm856_vm10, %v847_v61, %v1943_v56  ;;  %v1979_v50 = vsel %vm856_vm10, %v853_v27, %v1965_v20 }
 0x68d   :  { %v818_v3 = vpack.c.bf16 %v777_v23, %v776_v22  ;;  %v826_v26 = vpack.c.bf16 %v793_v37, %v792_v46 }
 0x68e   :  { %873 = vmatpush.bf16.msra.mxu2 %v823_v2  ;;  %892 = vmatpush.bf16.msrb.mxu0 %v831_v29 }
 0x68f   :  { %1422 = vmatmul.msk.bf16.vlgmr.msra.gmra.mxu3 %vm39_vm0, %v1943_v56 }
 0x692   :  { %874 = vmatpush.bf16.msra.mxu2 %v822_v62  ;;  %893 = vmatpush.bf16.msrb.mxu0 %v830_v5  ;;  %v851_v44 = vpop.permute.xlu0 %850 }
 0x693   :  { %v1976_v28 = vsel %vm856_vm10, %v851_v44, %v853_v27 }
 0x696   :  { %875 = vmatpush.bf16.msra.mxu2 %v821_v16  ;;  %894 = vmatpush.bf16.msrb.mxu0 %v829_v17 }
 0x69a   :  { %876 = vmatpush.bf16.msra.mxu2 %v820_v41  ;;  %895 = vmatpush.bf16.msrb.mxu0 %v828_v52 }
 0x69e   :  { %877 = vmatpush.bf16.msra.mxu2 %v819_v43  ;;  %896 = vmatpush.bf16.msrb.mxu0 %v827_v24 }
 0x69f   :  { %1423 = vmatmul.msk.bf16.gmra.mxu3 %vm39_vm0, %v1965_v20 }
 0x6a2   :  { %878 = vmatpush.bf16.msra.mxu2 %v818_v3  ;;  %897 = vmatpush.bf16.msrb.mxu0 %v826_v26 }
 0x6a5   :  { %879 = vmatmul.bf16.vlgmr.msra.gmra.mxu2 %v1969_v59  ;;  %898 = vmatmul.bf16.vlgmr.msrb.gmra.mxu0 %v1972_v4 }
 0x6b5   :  { %884 = vmatmul.bf16.gmra.mxu2 %v1976_v28  ;;  %903 = vmatmul.bf16.gmra.mxu0 %v1979_v50 }
 0x712   :  { %v918_v30 = vpop.f32.mrf.mxu3 }
 0x71a   :  { %v920_v35 = vpop.f32.mrf.mxu3 }
 0x722   :  { %v899_v51 = vpop.f32.mrf.mxu0  ;;  %v923_v62 = vpop.f32.mrf.mxu3 }
 0x728   :  { %v880_v33 = vpop.f32.mrf.mxu2 }
 0x729   :  { %v881_v1 = vadd.f32 %v1448_v32, %v880_v33 }
 0x72a   :  { %v901_v39 = vpop.f32.mrf.mxu0  ;;  %v925_v52 = vpop.f32.mrf.mxu3 }
 0x72b   :  { %v900_v36 = vadd.f32 %v899_v51, %v881_v1 }
 0x72d   :  { %v919_v0 = vadd.f32 %v918_v30, %v900_v36 }
 0x72f   :  { %v932_v19 = vmul.f32 %v919_v0, %v919_v0  ;;  %v928_v27 = vmul.f32 0.5, %v919_v0 }
 0x730   :  { %v882_v40 = vpop.f32.mrf.mxu2 }
 0x731   :  { %v883_v42 = vadd.f32 %v1448_v32, %v882_v40  ;;  %v936_v29 = vmul.f32 %v932_v19, %v919_v0 }
 0x732   :  { %v904_v48 = vpop.f32.mrf.mxu0 }
 0x733   :  { %v902_v2 = vadd.f32 %v901_v39, %v883_v42  ;;  %v940_v5 = vmul.f32 0.044715, %v936_v29 }
 0x735   :  { %v921_v31 = vadd.f32 %v920_v35, %v902_v2  ;;  %v944_v12 = vadd.f32 %v940_v5, %v919_v0 }
 0x737   :  { %v933_v47 = vmul.f32 %v921_v31, %v921_v31  ;;  %v948_v18 = vmul.f32 0.7978846, %v944_v12  ;;  %v929_v26 = vmul.f32 0.5, %v921_v31 }
 0x738   :  { %v885_v55 = vpop.f32.mrf.mxu2 }
 0x739   :  { %v937_v58 = vmul.f32 %v933_v47, %v921_v31  ;;  %v886_v60 = vadd.f32 %v1448_v32, %v885_v55 }
 0x73a   :  { %v906_v57 = vpop.f32.mrf.mxu0 }
 0x73b   :  { %v941_v63 = vmul.f32 0.044715, %v937_v58  ;;  %v905_v6 = vadd.f32 %v904_v48, %v886_v60 }
 0x73d   :  { %v945_v8 = vadd.f32 %v941_v63, %v921_v31  ;;  %v924_v10 = vadd.f32 %v923_v62, %v905_v6 }
 0x73f   :  { %v934_v15 = vmul.f32 %v924_v10, %v924_v10  ;;  %v949_v16 = vmul.f32 0.7978846, %v945_v8 }
 0x740   :  { %v887_v11 = vpop.f32.mrf.mxu2 }
 0x741   :  { %v938_v17 = vmul.f32 %v934_v15, %v924_v10  ;;  %v888_v13 = vadd.f32 %v1448_v32, %v887_v11  ;;  %1517 = vtanh.f32 %v949_v16  ;;  %v930_v32 = vmul.f32 0.5, %v924_v10 }
 0x742   :  { %1519 = vtanh.f32 %v948_v18 }
 0x743   :  { %v942_v21 = vmul.f32 0.044715, %v938_v17  ;;  %v907_v41 = vadd.f32 %v906_v57, %v888_v13 }
 0x745   :  { %v946_v53 = vadd.f32 %v942_v21, %v924_v10  ;;  %v926_v49 = vadd.f32 %v925_v52, %v907_v41 }
 0x747   :  { %v950_v7 = vmul.f32 0.7978846, %v946_v53  ;;  %v935_v45 = vmul.f32 %v926_v49, %v926_v49  ;;  %v1518_v23 = vpop.eup %1517  ;;  %v931_v40 = vmul.f32 0.5, %v926_v49 }
 0x748   :  { %v1520_v24 = vpop.eup %1519  ;;  %v957_v37 = vadd.f32 1.0, %v1518_v23 }
 0x749   :  { %1521 = vtanh.f32 %v950_v7  ;;  %v939_v22 = vmul.f32 %v935_v45, %v926_v49  ;;  %v956_v3 = vadd.f32 1.0, %v1520_v24 }
 0x74a   :  { %v961_v51 = vmul.f32 %v957_v37, %v929_v26 }
 0x74b   :  { %v943_v43 = vmul.f32 0.044715, %v939_v22  ;;  %v960_v30 = vmul.f32 %v956_v3, %v928_v27  ;;  %v1999_v3 = vld [vmem:[%s2168_s1 + $0x19] sm:$0xff] }
 0x74c   :  { %v965_v1 = vsel %vm39_vm0, %v961_v51, 0.0  ;;  %v1033_v27 = vrot.slane %v1999_v3, 3 }
 0x74d   :  { %v947_v46 = vadd.f32 %v943_v43, %v926_v49  ;;  %v964_v39 = vsel %vm39_vm0, %v960_v30, 0.0 }
 0x74e   :  { %v966_v19 = vadd.f32 %v965_v1, %v964_v39 }
 0x74f   :  { %v1522_v61 = vpop.eup %1521  ;;  %v951_v9 = vmul.f32 0.7978846, %v947_v46 }
 0x750   :  { %v958_v44 = vadd.f32 1.0, %v1522_v61 }
 0x751   :  { %1523 = vtanh.f32 %v951_v9 }
 0x752   :  { %v962_v33 = vmul.f32 %v958_v44, %v930_v32  ;;  %v1449_v32 = vld [vmem:[%s2168_s1 + $0x8] ss:$0 sm:$0xff] }
 0x754   :  { %v967_v35 = vsel %vm39_vm0, %v962_v33, 0.0 }
 0x755   :  { %v968_v29 = vadd.f32 %v967_v35, %v966_v19  ;;  %v1450_v35 = vld [vmem:[%s2168_s1 + $0x9] ss:$0 sm:$0xff]  ;;  %v1032_v19 = vrot.slane %v1999_v3, 2 }
 0x757   :  { %v1524_v36 = vpop.eup %1523 }
 0x758   :  { %v959_v42 = vadd.f32 1.0, %v1524_v36 }
 0x75a   :  { %v963_v2 = vmul.f32 %v959_v42, %v931_v40  ;;  %v1041_v40 = vperm.slane %v1033_v27, 0 }
 0x75c   :  { %v969_v31 = vsel %vm39_vm0, %v963_v2, 0.0 }
 0x75d   :  { %v970_v47 = vadd.f32 %v969_v31, %v968_v29 }
 0x75f   :  { %v971_v0 = vrot.slane %v970_v47, 4 }
 0x761   :  { %v972_v48 = vadd.f32 %v971_v0, %v970_v47  ;;  %v1451_v0 = vld [vmem:[%s2168_s1 + $0x21] ss:$0 sm:$0xff] }
 0x763   :  { %v973_v55 = vrot.slane %v972_v48, 2 }
 0x765   :  { %v974_v58 = vadd.f32 %v973_v55, %v972_v48 }
 0x767   :  { %v975_v60 = vrot.slane %v974_v58, 1 }
 0x769   :  { %v976_v62 = vadd.f32 %v975_v60, %v974_v58 }
 0x76b   :  { %v977_v5 = vmul.f32 %v976_v62, %v1661_v14  ;;  %v1040_v62 = vperm.slane %v1032_v19, 0 }
 0x76d   :  { %v978_v63 = vsub.f32 %v960_v30, %v977_v5  ;;  %v979_v6 = vsub.f32 %v961_v51, %v977_v5  ;;  %v980_v8 = vsub.f32 %v962_v33, %v977_v5  ;;  %v981_v10 = vsub.f32 %v963_v2, %v977_v5 }
 0x76e   :  { %v1037_v51 = vrot.slane %v1999_v3, 7  ;;  %v1036_v5 = vrot.slane %v1999_v3, 6 }
 0x76f   :  { %v982_v12 = vmul.f32 %v978_v63, %v978_v63  ;;  %v983_v15 = vmul.f32 %v979_v6, %v979_v6  ;;  %v984_v11 = vmul.f32 %v980_v8, %v980_v8  ;;  %v985_v16 = vmul.f32 %v981_v10, %v981_v10 }
 0x770   :  { %v1045_v42 = vperm.slane %v1037_v51, 0 }
 0x771   :  { %v986_v17 = vsel %vm39_vm0, %v982_v12, 0.0  ;;  %v987_v13 = vsel %vm39_vm0, %v983_v15, 0.0  ;;  %v989_v18 = vsel %vm39_vm0, %v984_v11, 0.0  ;;  %v991_v41 = vsel %vm39_vm0, %v985_v16, 0.0 }
 0x772   :  { %v988_v57 = vadd.f32 %v987_v13, %v986_v17 }
 0x774   :  { %v990_v21 = vadd.f32 %v989_v18, %v988_v57 }
 0x776   :  { %v992_v52 = vadd.f32 %v991_v41, %v990_v21 }
 0x778   :  { %v993_v53 = vrot.slane %v992_v52, 4 }
 0x77a   :  { %v994_v49 = vadd.f32 %v993_v53, %v992_v52  ;;  %v1044_v53 = vperm.slane %v1036_v5, 0 }
 0x77c   :  { %v995_v7 = vrot.slane %v994_v49, 2 }
 0x77e   :  { %v996_v45 = vadd.f32 %v995_v7, %v994_v49  ;;  %v1031_v49 = vrot.slane %v1999_v3, 1 }
 0x780   :  { %v997_v22 = vrot.slane %v996_v45, 1 }
 0x782   :  { %v998_v23 = vadd.f32 %v997_v22, %v996_v45 }
 0x784   :  { %v999_v43 = vmul.f32 %v998_v23, %v1661_v14 }
 0x786   :  { %v1000_v24 = vadd.f32 1e-05, %v999_v43 }
 0x788   :  { %1525 = vrsqrt.f32 %v1000_v24  ;;  %vm1007_vm12 = vweird.f32 %v1000_v24 }
 0x78e   :  { %v1526_v46 = vpop.eup %1525 }
 0x78f   :  { %v1002_v37 = vmul.f32 %v1526_v46, %v1000_v24  ;;  %vm1008_vm11 = vweird.f32 %v1526_v46 }
 0x790   :  { %vm1009_vm13 = vmor %vm1007_vm12, %vm1008_vm11 }
 0x791   :  { %v1003_v61 = vmul.f32 %v1526_v46, %v1002_v37  ;;  %v1035_v37 = vrot.slane %v1999_v3, 5 }
 0x793   :  { %v1004_v9 = vmul.f32 0.5, %v1003_v61 }
 0x795   :  { %v1005_v26 = vsub.f32 1.5, %v1004_v9 }
 0x797   :  { %v1006_v44 = vmul.f32 %v1526_v46, %v1005_v26 }
 0x799   :  { %v1010_v30 = vsel %vm1009_vm13, %v1526_v46, %v1006_v44  ;;  %v1039_v44 = vperm.slane %v1031_v49, 0 }
 0x79a   :  { %v1011_v33 = vmul.f32 %v1010_v30, %v978_v63  ;;  %v1012_v1 = vmul.f32 %v1010_v30, %v979_v6  ;;  %v1013_v36 = vmul.f32 %v1010_v30, %v980_v8  ;;  %v1014_v39 = vmul.f32 %v1010_v30, %v981_v10 }
 0x79b   :  { %v1043_v30 = vperm.slane %v1035_v37, 0 }
 0x79c   :  { %v1017_v2 = vmul.f32 %v1449_v32, %v1011_v33  ;;  %v1018_v29 = vmul.f32 %v1449_v32, %v1012_v1  ;;  %v1019_v31 = vmul.f32 %v1449_v32, %v1013_v36  ;;  %v1020_v47 = vmul.f32 %v1449_v32, %v1014_v39 }
 0x79e   :  { %v2013_v48 = vadd.f32 %v1450_v35, %v1017_v2  ;;  %v2015_v55 = vadd.f32 %v1450_v35, %v1018_v29  ;;  %v2017_v58 = vadd.f32 %v1450_v35, %v1019_v31  ;;  %v2019_v60 = vadd.f32 %v1450_v35, %v1020_v47 }
 0x79f   :  { %v1038_v29 = vperm.slane %v1999_v3, 0 }
 0x7a0   :  { %v1070_v63 = vmul.f32 %v1041_v40, %v2017_v58  ;;  %v1071_v6 = vmul.f32 %v1041_v40, %v2019_v60  ;;  %v1086_v8 = vmul.f32 %v1045_v42, %v2017_v58  ;;  %v1087_v10 = vmul.f32 %v1045_v42, %v2019_v60 }
 0x7a1   :  { %v1090_v12 = vmul.f32 %v1451_v0, %v2017_v58  ;;  %v1091_v15 = vmul.f32 %v1451_v0, %v2019_v60  ;;  %v1068_v11 = vmul.f32 %v1041_v40, %v2013_v48  ;;  %v1069_v16 = vmul.f32 %v1041_v40, %v2015_v55 }
 0x7a2   :  { %v1099_v17 = vpack.c.bf16 %v1071_v6, %v1070_v63  ;;  %v1107_v13 = vpack.c.bf16 %v1087_v10, %v1086_v8  ;;  %v1084_v57 = vmul.f32 %v1045_v42, %v2013_v48  ;;  %v1085_v18 = vmul.f32 %v1045_v42, %v2015_v55 }
 0x7a3   :  { %v1109_v21 = vpack.c.bf16 %v1091_v15, %v1090_v12  ;;  %v1088_v41 = vmul.f32 %v1451_v0, %v2013_v48  ;;  %v1089_v52 = vmul.f32 %v1451_v0, %v2015_v55  ;;  %v1098_v7 = vpack.c.bf16 %v1069_v16, %v1068_v11 }
 0x7a4   :  { %1112 = vmatpush.bf16.msra.mxu1 %v1099_v17  ;;  %1131 = vmatpush.bf16.msrb.mxu2 %v1107_v13  ;;  %v1106_v45 = vpack.c.bf16 %v1085_v18, %v1084_v57  ;;  %v1066_v22 = vmul.f32 %v1040_v62, %v2017_v58  ;;  %v1067_v23 = vmul.f32 %v1040_v62, %v2019_v60  ;;  %v1034_v42 = vrot.slane %v1999_v3, 4 }
 0x7a5   :  { %1156 = vmatpush.bf16.msra.mxu0 %v1109_v21  ;;  %v1108_v43 = vpack.c.bf16 %v1089_v52, %v1088_v41  ;;  %v1082_v24 = vmul.f32 %v1044_v53, %v2017_v58  ;;  %v1083_v46 = vmul.f32 %v1044_v53, %v2019_v60  ;;  %v1064_v9 = vmul.f32 %v1040_v62, %v2013_v48  ;;  %v1453_v41 = vld [vmem:[%s2168_s1 + $0xb] ss:$0 sm:$0xff] }
 0x7a6   :  { %v1097_v61 = vpack.c.bf16 %v1067_v23, %v1066_v22  ;;  %v1065_v26 = vmul.f32 %v1040_v62, %v2015_v55  ;;  %v1080_v51 = vmul.f32 %v1044_v53, %v2013_v48  ;;  %v1081_v32 = vmul.f32 %v1044_v53, %v2015_v55 }
 0x7a7   :  { %v1105_v27 = vpack.c.bf16 %v1083_v46, %v1082_v24  ;;  %v1062_v1 = vmul.f32 %v1039_v44, %v2017_v58  ;;  %v1063_v36 = vmul.f32 %v1039_v44, %v2019_v60  ;;  %v1078_v35 = vmul.f32 %v1043_v30, %v2017_v58 }
 0x7a8   :  { %1113 = vmatpush.bf16.msra.mxu1 %v1098_v7  ;;  %1132 = vmatpush.bf16.msrb.mxu2 %v1106_v45  ;;  %v1096_v33 = vpack.c.bf16 %v1065_v26, %v1064_v9  ;;  %v1104_v39 = vpack.c.bf16 %v1081_v32, %v1080_v51  ;;  %v1079_v40 = vmul.f32 %v1043_v30, %v2019_v60  ;;  %v1042_v62 = vperm.slane %v1034_v42, 0 }
 0x7a9   :  { %1157 = vmatpush.bf16.msra.mxu0 %v1108_v43  ;;  %v1095_v19 = vpack.c.bf16 %v1063_v36, %v1062_v1  ;;  %v1060_v2 = vmul.f32 %v1039_v44, %v2013_v48  ;;  %v1076_v47 = vmul.f32 %v1043_v30, %v2013_v48  ;;  %v1077_v0 = vmul.f32 %v1043_v30, %v2015_v55 }
 0x7aa   :  { %v1103_v31 = vpack.c.bf16 %v1079_v40, %v1078_v35  ;;  %v1058_v63 = vmul.f32 %v1038_v29, %v2017_v58  ;;  %v1059_v6 = vmul.f32 %v1038_v29, %v2019_v60  ;;  %v1074_v10 = vmul.f32 %v1042_v62, %v2017_v58 }
 0x7ab   :  { %v1102_v8 = vpack.c.bf16 %v1077_v0, %v1076_v47  ;;  %v1075_v12 = vmul.f32 %v1042_v62, %v2019_v60  ;;  %v1056_v15 = vmul.f32 %v1038_v29, %v2013_v48  ;;  %v1057_v11 = vmul.f32 %v1038_v29, %v2015_v55 }
 0x7ac   :  { %1424 = vmatmul.msk.bf16.vlgmr.msra.gmra.mxu0 %vm39_vm0, %v1943_v56  ;;  %1114 = vmatpush.bf16.msra.mxu1 %v1097_v61  ;;  %v1061_v56 = vmul.f32 %v1039_v44, %v2015_v55  ;;  %v1093_v3 = vpack.c.bf16 %v1059_v6, %v1058_v63  ;;  %v1072_v17 = vmul.f32 %v1042_v62, %v2013_v48 }
 0x7ad   :  { %1133 = vmatpush.bf16.msrb.mxu2 %v1105_v27  ;;  %v1101_v16 = vpack.c.bf16 %v1075_v12, %v1074_v10  ;;  %v1073_v13 = vmul.f32 %v1042_v62, %v2015_v55  ;;  %v1092_v58 = vpack.c.bf16 %v1057_v11, %v1056_v15  ;;  %v1452_v55 = vld [vmem:[%s2168_s1 + $0xa] ss:$0 sm:$0xff] }
 0x7ae   :  { %v1094_v5 = vpack.c.bf16 %v1061_v56, %v1060_v2 }
 0x7af   :  { %v1100_v57 = vpack.c.bf16 %v1073_v13, %v1072_v17  ;;  %v1282_v17 = vld [vmem:[#allocation2 + $0x80] sm:$0xff] }
 0x7b0   :  { %1115 = vmatpush.bf16.msra.mxu1 %v1096_v33 }
 0x7b1   :  { %1134 = vmatpush.bf16.msrb.mxu2 %v1104_v39 }
 0x7b4   :  { %1116 = vmatpush.bf16.msra.mxu1 %v1095_v19 }
 0x7b5   :  { %1135 = vmatpush.bf16.msrb.mxu2 %v1103_v31 }
 0x7b8   :  { %1117 = vmatpush.bf16.msra.mxu1 %v1094_v5 }
 0x7b9   :  { %1136 = vmatpush.bf16.msrb.mxu2 %v1102_v8 }
 0x7bc   :  { %1425 = vmatmul.msk.bf16.gmra.mxu0 %vm39_vm0, %v1965_v20  ;;  %1118 = vmatpush.bf16.msra.mxu1 %v1093_v3 }
 0x7bd   :  { %1137 = vmatpush.bf16.msrb.mxu2 %v1101_v16  ;;  %v1281_v16 = vld [vmem:[#allocation2 + $0x58] sm:$0xff] }
 0x7be   :  { %v1286_v13 = vpack.c.bf16 %v1282_v17, %v1281_v16 }
 0x7c0   :  { %1119 = vmatpush.bf16.msra.mxu1 %v1092_v58  ;;  %1301 = vmatpush.bf16.msrb.mxu3 %v1286_v13 }
 0x7c1   :  { %1138 = vmatpush.bf16.msrb.mxu2 %v1100_v57 }
 0x7c3   :  { %1120 = vmatmul.bf16.vlgmr.msra.gmra.mxu1 %v1969_v59 }
 0x7c4   :  { %1139 = vmatmul.bf16.vlgmr.msrb.gmra.mxu2 %v1972_v4 }
 0x7d3   :  { %1125 = vmatmul.bf16.gmra.mxu1 %v1976_v28 }
 0x7d4   :  { %1144 = vmatmul.bf16.gmra.mxu2 %v1979_v50 }
 0x829   :  { %v1159_v20 = vpop.f32.mrf.mxu0 }
 0x831   :  { %v1161_v53 = vpop.f32.mrf.mxu0 }
 0x839   :  { %v1164_v37 = vpop.f32.mrf.mxu0 }
 0x840   :  { %v1121_v48 = vpop.f32.mrf.mxu1 }
 0x841   :  { %v1122_v60 = vadd.f32 %v1452_v55, %v1121_v48  ;;  %v1166_v1 = vpop.f32.mrf.mxu0 }
 0x847   :  { %v1140_v18 = vpop.f32.mrf.mxu2 }
 0x848   :  { %v1141_v21 = vadd.f32 %v1140_v18, %v1122_v60  ;;  %v1123_v59 = vpop.f32.mrf.mxu1 }
 0x849   :  { %v1124_v28 = vadd.f32 %v1452_v55, %v1123_v59 }
 0x84a   :  { %v1160_v52 = vadd.f32 %v1159_v20, %v1141_v21  ;;  %v1280_v20 = vld [vmem:[#allocation2 + $0x30] sm:$0xff] }
 0x84c   :  { %v1171_v4 = vmul.f32 %v1453_v41, %v1160_v52 }
 0x84e   :  { %v2077_v50 = vadd.f32 %v1171_v4, %v1830_v25 }
 0x84f   :  { %v1142_v49 = vpop.f32.mrf.mxu2 }
 0x850   :  { %v1143_v7 = vadd.f32 %v1142_v49, %v1124_v28  ;;  %v1179_v45 = vsel %vm39_vm0, %v2077_v50, 0.0  ;;  %v1126_v22 = vpop.f32.mrf.mxu1 }
 0x851   :  { %1180 = vadd.xlane.f32.xlu0 %v1179_v45  ;;  %v1127_v24 = vadd.f32 %v1452_v55, %v1126_v22 }
 0x852   :  { %v1162_v23 = vadd.f32 %v1161_v53, %v1143_v7 }
 0x854   :  { %v1172_v43 = vmul.f32 %v1453_v41, %v1162_v23 }
 0x856   :  { %v2082_v46 = vadd.f32 %v1172_v43, %v1840_v34 }
 0x857   :  { %v1145_v61 = vpop.f32.mrf.mxu2 }
 0x858   :  { %v1146_v9 = vadd.f32 %v1145_v61, %v1127_v24  ;;  %v1182_v25 = vsel %vm39_vm0, %v2082_v46, 0.0  ;;  %v1128_v44 = vpop.f32.mrf.mxu1 }
 0x859   :  { %1183 = vadd.xlane.f32.xlu1 %v1182_v25  ;;  %v1129_v51 = vadd.f32 %v1452_v55, %v1128_v44  ;;  %v1279_v55 = vld [vmem:[#allocation2 + $0x8] sm:$0xff] }
 0x85a   :  { %v1165_v26 = vadd.f32 %v1164_v37, %v1146_v9  ;;  %v1285_v18 = vpack.c.bf16 %v1280_v20, %v1279_v55  ;;  %v1353_v55 = vld [vmem:[%s2170_s3 + $0x9] sm:$0xff]  ;;  %v1456_v20 = vld [vmem:[%s2170_s3] ss:$0 sm:$0xff] }
 0x85c   :  { %v1173_v27 = vmul.f32 %v1453_v41, %v1165_v26  ;;  %1302 = vmatpush.bf16.msrb.mxu3 %v1285_v18 }
 0x85e   :  { %v2087_v32 = vadd.f32 %v1173_v27, %v1835_v54  ;;  %v1454_v27 = vld [vmem:[%s2168_s1 + $0xc] ss:$0 sm:$0xff] }
 0x85f   :  { %v1147_v30 = vpop.f32.mrf.mxu2 }
 0x860   :  { %v1148_v33 = vadd.f32 %v1147_v30, %v1129_v51  ;;  %v1185_v34 = vsel %vm39_vm0, %v2087_v32, 0.0 }
 0x861   :  { %1186 = vadd.xlane.f32.xlu2 %v1185_v34 }
 0x862   :  { %v1167_v36 = vadd.f32 %v1166_v1, %v1148_v33 }
 0x864   :  { %v1174_v39 = vmul.f32 %v1453_v41, %v1167_v36 }
 0x866   :  { %v2092_v35 = vadd.f32 %v1174_v39, %v1843_v38 }
 0x868   :  { %v1188_v40 = vsel %vm39_vm0, %v2092_v35, 0.0 }
 0x869   :  { %1189 = vadd.xlane.f32.xlu0 %v1188_v40 }
 0x8c4   :  { %v1181_v42 = vpop.xlane.xlu0 %1180 }
 0x8c5   :  { %v1191_v54 = vmul.f32 %v1181_v42, %v1661_v14 }
 0x8c7   :  { %v1195_v19 = vsub.f32 %v2077_v50, %v1191_v54 }
 0x8c9   :  { %v1199_v2 = vmul.f32 %v1195_v19, %v1195_v19 }
 0x8cb   :  { %v1203_v56 = vsel %vm39_vm0, %v1199_v2, 0.0 }
 0x8cc   :  { %v1184_v29 = vpop.xlane.xlu1 %1183  ;;  %1204 = vadd.xlane.f32.xlu1 %v1203_v56 }
 0x8cd   :  { %v1192_v31 = vmul.f32 %v1184_v29, %v1661_v14 }
 0x8cf   :  { %v2101_v47 = vsub.f32 %v2082_v46, %v1192_v31 }
 0x8d1   :  { %v1200_v38 = vmul.f32 %v2101_v47, %v2101_v47 }
 0x8d3   :  { %v1206_v0 = vsel %vm39_vm0, %v1200_v38, 0.0 }
 0x8d4   :  { %v1187_v62 = vpop.xlane.xlu2 %1186  ;;  %1207 = vadd.xlane.f32.xlu2 %v1206_v0 }
 0x8d5   :  { %v1193_v5 = vmul.f32 %v1187_v62, %v1661_v14 }
 0x8d7   :  { %v2108_v63 = vsub.f32 %v2087_v32, %v1193_v5 }
 0x8d9   :  { %v1201_v6 = vmul.f32 %v2108_v63, %v2108_v63 }
 0x8db   :  { %v1209_v8 = vsel %vm39_vm0, %v1201_v6, 0.0 }
 0x8dc   :  { %1210 = vadd.xlane.f32.xlu0 %v1209_v8  ;;  %v1190_v10 = vpop.xlane.xlu0 %1189 }
 0x8dd   :  { %v1194_v12 = vmul.f32 %v1190_v10, %v1661_v14 }
 0x8df   :  { %v2115_v3 = vsub.f32 %v2092_v35, %v1194_v12 }
 0x8e1   :  { %v1202_v15 = vmul.f32 %v2115_v3, %v2115_v3 }
 0x8e3   :  { %v1212_v11 = vsel %vm39_vm0, %v1202_v15, 0.0 }
 0x8e4   :  { %1213 = vadd.xlane.f32.xlu1 %v1212_v11 }
 0x93f   :  { %v1205_v58 = vpop.xlane.xlu1 %1204 }
 0x940   :  { %v1215_v57 = vmul.f32 %v1205_v58, %v1661_v14 }
 0x942   :  { %v1219_v48 = vadd.f32 1e-05, %v1215_v57  ;;  %v1354_v57 = vld [vmem:[%s2170_s3 + $0x11] sm:$0xff] }
 0x944   :  { %1527 = vrsqrt.f32 %v1219_v48  ;;  %vm1229_vm15 = vweird.f32 %v1219_v48 }
 0x947   :  { %v1208_v60 = vpop.xlane.xlu2 %1207 }
 0x948   :  { %v1216_v21 = vmul.f32 %v1208_v60, %v1661_v14 }
 0x94a   :  { %v1528_v41 = vpop.eup %1527  ;;  %v1220_v59 = vadd.f32 1e-05, %v1216_v21 }
 0x94b   :  { %v1224_v52 = vmul.f32 %v1528_v41, %v1219_v48  ;;  %vm1230_vm14 = vweird.f32 %v1528_v41 }
 0x94c   :  { %1529 = vrsqrt.f32 %v1220_v59  ;;  %vm1231_vm1 = vmor %vm1229_vm15, %vm1230_vm14  ;;  %vm1239_vm3 = vweird.f32 %v1220_v59 }
 0x94d   :  { %v1225_v4 = vmul.f32 %v1528_v41, %v1224_v52 }
 0x94f   :  { %v1226_v53 = vmul.f32 0.5, %v1225_v4  ;;  %v1211_v28 = vpop.xlane.xlu0 %1210 }
 0x950   :  { %v1217_v49 = vmul.f32 %v1211_v28, %v1661_v14 }
 0x951   :  { %v1227_v7 = vsub.f32 1.5, %v1226_v53 }
 0x952   :  { %v1530_v45 = vpop.eup %1529  ;;  %v1221_v22 = vadd.f32 1e-05, %v1217_v49 }
 0x953   :  { %v1228_v23 = vmul.f32 %v1528_v41, %v1227_v7  ;;  %v1234_v43 = vmul.f32 %v1530_v45, %v1220_v59  ;;  %vm1240_vm2 = vweird.f32 %v1530_v45 }
 0x954   :  { %1531 = vrsqrt.f32 %v1221_v22  ;;  %vm1241_vm4 = vmor %vm1239_vm3, %vm1240_vm2  ;;  %vm1249_vm6 = vweird.f32 %v1221_v22 }
 0x955   :  { %v1235_v24 = vmul.f32 %v1530_v45, %v1234_v43  ;;  %v1232_v37 = vsel %vm1231_vm1, %v1528_v41, %v1228_v23 }
 0x956   :  { %v1263_v51 = vmul.f32 %v1232_v37, %v1195_v19 }
 0x957   :  { %v1236_v61 = vmul.f32 0.5, %v1235_v24  ;;  %v1214_v9 = vpop.xlane.xlu1 %1213 }
 0x958   :  { %v1218_v25 = vmul.f32 %v1214_v9, %v1661_v14  ;;  %v1455_v14 = vld [vmem:[%s2168_s1 + $0xd] ss:$0 sm:$0xff]  ;;  %v1269_v39 = vmul.f32 %v1454_v27, %v1263_v51 }
 0x959   :  { %v1237_v26 = vsub.f32 1.5, %v1236_v61 }
 0x95a   :  { %v1532_v44 = vpop.eup %1531  ;;  %v1222_v30 = vadd.f32 1e-05, %v1218_v25  ;;  %v1275_v19 = vadd.f32 %v1455_v14, %v1269_v39 }
 0x95b   :  { %v1238_v33 = vmul.f32 %v1530_v45, %v1237_v26  ;;  %v1244_v34 = vmul.f32 %v1532_v44, %v1221_v22  ;;  %vm1250_vm5 = vweird.f32 %v1532_v44 }
 0x95c   :  { %1533 = vrsqrt.f32 %v1222_v30  ;;  %vm1251_vm7 = vmor %vm1249_vm6, %vm1250_vm5  ;;  %vm1259_vm9 = vweird.f32 %v1222_v30 }
 0x95d   :  { %v1242_v1 = vsel %vm1241_vm4, %v1530_v45, %v1238_v33  ;;  %v1245_v36 = vmul.f32 %v1532_v44, %v1244_v34 }
 0x95e   :  { %v1264_v40 = vmul.f32 %v1242_v1, %v2101_v47 }
 0x95f   :  { %v1246_v42 = vmul.f32 0.5, %v1245_v36 }
 0x960   :  { %v1270_v54 = vmul.f32 %v1454_v27, %v1264_v40 }
 0x961   :  { %v1247_v2 = vsub.f32 1.5, %v1246_v42 }
 0x962   :  { %v1534_v56 = vpop.eup %1533  ;;  %v1276_v29 = vadd.f32 %v1455_v14, %v1270_v54 }
 0x963   :  { %v1248_v31 = vmul.f32 %v1532_v44, %v1247_v2  ;;  %v1254_v38 = vmul.f32 %v1534_v56, %v1222_v30  ;;  %vm1260_vm8 = vweird.f32 %v1534_v56 }
 0x964   :  { %v1283_v0 = vpack.c.bf16 %v1276_v29, %v1275_v19  ;;  %vm1261_vm10 = vmor %vm1259_vm9, %vm1260_vm8 }
 0x965   :  { %v1255_v62 = vmul.f32 %v1534_v56, %v1254_v38  ;;  %v1252_v5 = vsel %vm1251_vm7, %v1532_v44, %v1248_v31 }
 0x966   :  { %1426 = vmatmul.msk.bf16.vlgmr.msrb.gmra.mxu3 %vm39_vm0, %v1283_v0  ;;  %v1265_v47 = vmul.f32 %v1252_v5, %v2108_v63  ;;  %v1355_v63 = vld [vmem:[%s2170_s3 + $0x19] sm:$0xff] }
 0x967   :  { %v1256_v6 = vmul.f32 0.5, %v1255_v62  ;;  %v1357_v48 = vpack.c.bf16 %v1355_v63, %v1354_v57 }
 0x968   :  { %v1271_v11 = vmul.f32 %v1454_v27, %v1265_v47 }
 0x969   :  { %v1257_v8 = vsub.f32 1.5, %v1256_v6  ;;  %1366 = vmatpush.bf16.xpose.msrb.mxu1 %v1357_v48 }
 0x96a   :  { %v1277_v17 = vadd.f32 %v1455_v14, %v1271_v11 }
 0x96b   :  { %v1258_v10 = vmul.f32 %v1534_v56, %v1257_v8 }
 0x96d   :  { %v1262_v12 = vsel %vm1261_vm10, %v1534_v56, %v1258_v10 }
 0x96e   :  { %v1266_v15 = vmul.f32 %v1262_v12, %v2115_v3  ;;  %v1352_v3 = vld [vmem:[%s2170_s3 + $0x1] sm:$0xff]  ;;  %v1457_v12 = vld [vmem:[%s2168_s1 + $0xe] ss:$0 sm:$0xff] }
 0x96f   :  { %v1356_v60 = vpack.c.bf16 %v1353_v55, %v1352_v3 }
 0x970   :  { %v1272_v16 = vmul.f32 %v1454_v27, %v1266_v15  ;;  %v1458_v15 = vld [vmem:[%s2168_s1 + $0xf] ss:$0 sm:$0xff]  ;;  %s1602_s1 = smov [#allocation5]  }
 0x971   :  { %1367 = vmatpush.bf16.xpose.msrb.mxu1 %v1356_v60  ;;  %s1397_s2 = sshll.u32 %s1602_s1, 4  ;;  %s1398_s2 = int_to_ptr.vmem [resolvable:$true] %s1397_s2 }
 0x972   :  { %v1278_v13 = vadd.f32 %v1455_v14, %v1272_v16 }
 0x974   :  { %v1284_v58 = vpack.c.bf16 %v1278_v13, %v1277_v17 }
 0x976   :  { %1427 = vmatmul.msk.bf16.gmra.mxu3 %vm39_vm0, %v1284_v58 }
 0x9e9   :  { %v1304_v18 = vpop.f32.mrf.mxu3 }
 0x9ea   :  { %v1305_v21 = vadd.f32 %v1456_v20, %v1304_v18 }
 0x9ec   :  { %v1318_v41 = vmul.f32 %v1305_v21, %v1305_v21  ;;  %v1314_v1 = vmul.f32 0.5, %v1305_v21 }
 0x9ee   :  { %v1322_v59 = vmul.f32 %v1318_v41, %v1305_v21 }
 0x9f0   :  { %v1326_v52 = vmul.f32 0.044715, %v1322_v59 }
 0x9f1   :  { %v1306_v4 = vpop.f32.mrf.mxu3 }
 0x9f2   :  { %v1330_v53 = vadd.f32 %v1326_v52, %v1305_v21  ;;  %v1307_v28 = vadd.f32 %v1456_v20, %v1306_v4 }
 0x9f4   :  { %v1319_v49 = vmul.f32 %v1307_v28, %v1307_v28  ;;  %v1334_v7 = vmul.f32 0.7978846, %v1330_v53  ;;  %v1315_v36 = vmul.f32 0.5, %v1307_v28 }
 0x9f6   :  { %v1323_v45 = vmul.f32 %v1319_v49, %v1307_v28  ;;  %1535 = vtanh.f32 %v1334_v7 }
 0x9f8   :  { %v1327_v22 = vmul.f32 0.044715, %v1323_v45 }
 0x9f9   :  { %v1309_v23 = vpop.f32.mrf.mxu3 }
 0x9fa   :  { %v1331_v43 = vadd.f32 %v1327_v22, %v1307_v28  ;;  %v1310_v24 = vadd.f32 %v1456_v20, %v1309_v23 }
 0x9fc   :  { %v1335_v37 = vmul.f32 0.7978846, %v1331_v43  ;;  %v1320_v61 = vmul.f32 %v1310_v24, %v1310_v24  ;;  %v1536_v25 = vpop.eup %1535  ;;  %v1316_v62 = vmul.f32 0.5, %v1310_v24 }
 0x9fd   :  { %v1342_v30 = vadd.f32 1.0, %v1536_v25 }
 0x9fe   :  { %1537 = vtanh.f32 %v1335_v37  ;;  %v1324_v9 = vmul.f32 %v1320_v61, %v1310_v24 }
 0x9ff   :  { %v1346_v42 = vmul.f32 %v1342_v30, %v1314_v1 }
 0xa00   :  { %v1328_v26 = vmul.f32 0.044715, %v1324_v9 }
 0xa01   :  { %v1311_v44 = vpop.f32.mrf.mxu3 }
 0xa02   :  { %v1312_v27 = vadd.f32 %v1456_v20, %v1311_v44  ;;  %v1332_v51 = vadd.f32 %v1328_v26, %v1310_v24 }
 0xa04   :  { %v1538_v33 = vpop.eup %1537  ;;  %v1321_v34 = vmul.f32 %v1312_v27, %v1312_v27  ;;  %v1336_v40 = vmul.f32 0.7978846, %v1332_v51  ;;  %v1317_v5 = vmul.f32 0.5, %v1312_v27 }
 0xa05   :  { %v1343_v14 = vadd.f32 1.0, %v1538_v33 }
 0xa06   :  { %v1325_v39 = vmul.f32 %v1321_v34, %v1312_v27  ;;  %1539 = vtanh.f32 %v1336_v40 }
 0xa07   :  { %v1347_v54 = vmul.f32 %v1343_v14, %v1315_v36 }
 0xa08   :  { %v1329_v2 = vmul.f32 0.044715, %v1325_v39 }
 0xa09   :  { %v1350_v56 = vpack.c.bf16 %v1347_v54, %v1346_v42 }
 0xa0a   :  { %v1333_v19 = vadd.f32 %v1329_v2, %v1312_v27 }
 0xa0b   :  { %1368 = vmatmul.bf16.vlgmr.msrb.gmra.mxu1 %v1350_v56 }
 0xa0c   :  { %v1337_v29 = vmul.f32 0.7978846, %v1333_v19  ;;  %v1540_v31 = vpop.eup %1539 }
 0xa0d   :  { %v1344_v38 = vadd.f32 1.0, %v1540_v31 }
 0xa0e   :  { %1541 = vtanh.f32 %v1337_v29 }
 0xa0f   :  { %v1348_v8 = vmul.f32 %v1344_v38, %v1316_v62 }
 0xa14   :  { %v1542_v0 = vpop.eup %1541 }
 0xa15   :  { %v1345_v6 = vadd.f32 1.0, %v1542_v0 }
 0xa17   :  { %v1349_v47 = vmul.f32 %v1345_v6, %v1317_v5 }
 0xa19   :  { %v1351_v10 = vpack.c.bf16 %v1349_v47, %v1348_v8 }
 0xa1b   :  { %1373 = vmatmul.bf16.gmra.mxu1 %v1351_v10 }
 0xa88   :  { %v1369_v11 = vpop.f32.mrf.mxu1 }
 0xa89   :  { %v1370_v16 = vadd.f32 %v1457_v12, %v1369_v11 }
 0xa8b   :  { %v1381_v17 = vmul.f32 %v1458_v15, %v1370_v16 }
 0xa8d   :  { %v1385_v13 = vadd.f32 %v1381_v17, %v2077_v50 }
 0xa8f   :  { %1389 = vst.msk [vmem:[#allocation5] sm:$0xff] %vm39_vm0, %v1385_v13 }
 0xa90   :  { %v1371_v58 = vpop.f32.mrf.mxu1 }
 0xa91   :  { %v1372_v57 = vadd.f32 %v1457_v12, %v1371_v58 }
 0xa93   :  { %v1382_v63 = vmul.f32 %v1458_v15, %v1372_v57 }
 0xa95   :  { %v1386_v48 = vadd.f32 %v1382_v63, %v2082_v46 }
 0xa97   :  { %1390 = vst.msk [vmem:[#allocation5 + $0x8] sm:$0xff] %vm39_vm0, %v1386_v48 }
 0xa98   :  { %v1374_v3 = vpop.f32.mrf.mxu1 }
 0xa99   :  { %v1375_v55 = vadd.f32 %v1457_v12, %v1374_v3 }
 0xa9b   :  { %v1383_v20 = vmul.f32 %v1458_v15, %v1375_v55 }
 0xa9d   :  { %v1387_v60 = vadd.f32 %v1383_v20, %v2087_v32 }
 0xa9f   :  { %1391 = vst.msk [vmem:[#allocation5 + $0x10] sm:$0xff] %vm39_vm0, %v1387_v60 }
 0xaa0   :  { %v1376_v18 = vpop.f32.mrf.mxu1 }
 0xaa1   :  { %v1377_v21 = vadd.f32 %v1457_v12, %v1376_v18 }
 0xaa3   :  { %v1384_v50 = vmul.f32 %v1458_v15, %v1377_v21 }
 0xaa5   :  { %v1388_v46 = vadd.f32 %v1384_v50, %v2092_v35 }
 0xaa7   :  { %1392 = vst.msk [vmem:[#allocation5 + $0x18] sm:$0xff] %vm39_vm0, %v1388_v46 }
 0xaa8   :  { %1405 = dma.vmem_to_hbm [thread:$0]  %s1398_s2, 512, %s1400_s28, [#allocation4], %s1603_s0, %s1603_s0, %s1604_s29  }
 0xaa9   :  { %1593 = dma.done.wait [#allocation4], 512  }
 0xaaa   :  { %1594 = vsyncadd [#allocation4], 4294966784 }
 0xaab   :  { %1410 = vsyncpa [#allocation3], 1 }
 0xaac   :  { %1411 = vsyncpa [#allocation4], 1 }

</bundles_post_ra>
